<compile_context>
chip_gen: v6e
topology: v6e:2x2x1
jax: 0.10.0
libtpu: 0.0.40
codegen_flags: <defaults>
</compile_context>

<pallas_src>
import functools

import jax
import jax.numpy as jnp
from jax.experimental import pallas as pl
from jax.experimental.pallas import tpu as pltpu


# ----------------------------------------------------------------------------
# Fused kernel: 2-layer LSTM recurrence (+ last-step fc) over a time chunk.
# Hidden / cell state for both layers lives in VMEM scratch and persists
# across grid iterations (time axis is sequential -> 'arbitrary').
# ----------------------------------------------------------------------------
def fused_lstm_fc_kernel(xp_ref, whh0_ref, wih1_ref, whh1_ref, b1_ref,
                         wfc_ref, bfc_ref, out_ref,
                         h0_sc, c0_sc, h1_sc, c1_sc,
                         *, t_total, time_chunk, hidden):
    H = hidden
    B = h0_sc.shape[0]
    G = 4 * H
    c = pl.program_id(0)

    @pl.when(c == 0)
    def _():
        h0_sc[...] = jnp.zeros_like(h0_sc)
        c0_sc[...] = jnp.zeros_like(c0_sc)
        h1_sc[...] = jnp.zeros_like(h1_sc)
        c1_sc[...] = jnp.zeros_like(c1_sc)

    # Loop-invariant loads / broadcasts hoisted out of the unrolled time loop
    # (JAX does not CSE broadcast_in_dim; avoid re-materializing per step).
    whh0 = whh0_ref[...]                                   # (H, 4H)
    wih1 = wih1_ref[...]                                   # (H, 4H)
    whh1 = whh1_ref[...]                                   # (H, 4H)
    b1b = jnp.broadcast_to(b1_ref[...], (B, G))            # (B, 4H)

    needs_guard = (t_total % time_chunk) != 0              # static (trace time)
    base = c * time_chunk                                  # global step offset

    def cell(gates, c_prev):
        # Gate columns pre-ordered [i, f, o, g]: the three sigmoids form one
        # contiguous (B, 3H) slab -> back-to-back EUP pushes. f32 (v5e-safe).
        ifo = jax.nn.sigmoid(gates[:, :3 * H])
        g_g = jnp.tanh(gates[:, 3 * H:])
        i_g = ifo[:, 0 * H:1 * H]
        f_g = ifo[:, 1 * H:2 * H]
        o_g = ifo[:, 2 * H:3 * H]
        c_new = f_g * c_prev + i_g * g_g
        h_new = o_g * jnp.tanh(c_new)
        return h_new, c_new

    def step(s, carry):
        h0, c0, h1, c1 = carry
        # Layer 0: x@Wih0 + both biases precomputed for all t -> only h@Whh0.
        g0 = xp_ref[s] + jnp.dot(h0, whh0, preferred_element_type=jnp.float32)
        h0n, c0n = cell(g0, c0)
        # Layer 1: two accumulating dots (no per-step concat copy).
        g1 = (b1b
              + jnp.dot(h0n, wih1, preferred_element_type=jnp.float32)
              + jnp.dot(h1, whh1, preferred_element_type=jnp.float32))
        h1n, c1n = cell(g1, c1)
        if needs_guard:
            # Padded trailing timesteps must not update state (a zero-input
            # LSTM step is not identity).
            valid = (base + s) < t_total
            h0n = jnp.where(valid, h0n, h0)
            c0n = jnp.where(valid, c0n, c0)
            h1n = jnp.where(valid, h1n, h1)
            c1n = jnp.where(valid, c1n, c1)
        return h0n, c0n, h1n, c1n

    carry = (h0_sc[...], c0_sc[...], h1_sc[...], c1_sc[...])
    # Fully unrolled: lets the scheduler overlap the two layers across steps.
    h0, c0, h1, c1 = jax.lax.fori_loop(0, time_chunk, step, carry, unroll=True)
    h0_sc[...] = h0
    c0_sc[...] = c0
    h1_sc[...] = h1
    c1_sc[...] = c1

    # Only the last timestep feeds the classifier: fuse the fc here and write
    # a single (B, O) result once.  (dropout p=0.3 is identity at inference.)
    @pl.when(c == pl.num_programs(0) - 1)
    def _():
        out_ref[...] = (jnp.dot(h1, wfc_ref[...],
                                preferred_element_type=jnp.float32)
                        + bfc_ref[...]).astype(out_ref.dtype)


def _vmem_limit_bytes(tc, B, H, O):
    """Derive the scoped-VMEM request from actual buffer needs."""
    xproj_buf = 2 * tc * B * 4 * H * 4            # double-buffered input chunk
    weights = 2 * (3 * H * 4 * H + H * O + 4 * H + O) * 4
    scratch = 4 * B * H * 4 + 2 * B * O * 4
    need = xproj_buf + weights + scratch + (4 << 20)   # 4 MiB headroom
    # Cap at 56 MiB so it fits v7x's 64 MiB VMEM; v5e/v6e (128 MiB) could be
    # raised to ~100 MiB for deeper chunks.
    return int(min(max(need, 32 << 20), 56 << 20))


def _pick_time_chunk(T, B, H, budget_bytes=32 << 20, cap=32):
    """Fixed chunk from a VMEM budget: 2 * tc * B * 4H * 4B <= budget.
    Never collapses to 1 for awkward T (remainder is guarded in-kernel)."""
    per_step = B * 4 * H * 4
    tc = max(1, min(cap, budget_bytes // (2 * per_step)))
    return int(min(tc, max(T, 1)))


def fused_lstm_fc(xproj, whh0_t, wih1_t, whh1_t, b1, wfc_t, bfc,
                  time_chunk, t_total):
    """xproj: (Tp, B, 4H) f32 precomputed x@Wih0 + b (time-major, Tp%tc==0).
    whh0_t/wih1_t/whh1_t: (H, 4H) f32.  b1: (1, 4H).  wfc_t: (H, O).  bfc: (1, O)."""
    Tp, B, G = xproj.shape
    H = G // 4
    O = wfc_t.shape[1]
    assert Tp % time_chunk == 0
    grid = (Tp // time_chunk,)
    kernel = functools.partial(fused_lstm_fc_kernel, t_total=t_total,
                               time_chunk=time_chunk, hidden=H)
    return pl.pallas_call(
        kernel,
        out_shape=jax.ShapeDtypeStruct((B, O), jnp.float32),
        grid_spec=pltpu.PrefetchScalarGridSpec(
            num_scalar_prefetch=0,
            grid=grid,
            in_specs=[
                pl.BlockSpec((time_chunk, B, G), lambda c: (c, 0, 0)),  # xproj
                pl.BlockSpec((H, G), lambda c: (0, 0)),        # Whh0
                pl.BlockSpec((H, G), lambda c: (0, 0)),        # Wih1
                pl.BlockSpec((H, G), lambda c: (0, 0)),        # Whh1
                pl.BlockSpec((1, G), lambda c: (0, 0)),        # layer-1 bias
                pl.BlockSpec((H, O), lambda c: (0, 0)),        # fc weight
                pl.BlockSpec((1, O), lambda c: (0, 0)),        # fc bias
            ],
            out_specs=pl.BlockSpec((B, O), lambda c: (0, 0)),
            scratch_shapes=[
                pltpu.VMEM((B, H), jnp.float32),   # h0
                pltpu.VMEM((B, H), jnp.float32),   # c0
                pltpu.VMEM((B, H), jnp.float32),   # h1
                pltpu.VMEM((B, H), jnp.float32),   # c1
            ],
        ),
        compiler_params=pltpu.CompilerParams(
            dimension_semantics=("arbitrary",),    # recurrence is sequential
            vmem_limit_bytes=_vmem_limit_bytes(time_chunk, B, H, O),
        ),
    )(xproj, whh0_t, wih1_t, whh1_t, b1, wfc_t, bfc)


# ----------------------------------------------------------------------------
# Parameter construction (deterministic, PyTorch-style layout & init)
# ----------------------------------------------------------------------------
def init_params(key, vocab_size, embedding_dim, hidden_dim, output_dim):
    ks = jax.random.split(key, 12)
    H, E, O = hidden_dim, embedding_dim, output_dim
    bound = 1.0 / jnp.sqrt(H)

    def u(k, shape, b):
        return jax.random.uniform(k, shape, jnp.float32, -b, b)

    return {
        "embedding": jax.random.normal(ks[0], (vocab_size, E), jnp.float32),
        # layer 0 (input size E) -- PyTorch gate order [i, f, g, o]
        "wih0": u(ks[1], (4 * H, E), bound),
        "whh0": u(ks[2], (4 * H, H), bound),
        "bih0": u(ks[3], (4 * H,), bound),
        "bhh0": u(ks[4], (4 * H,), bound),
        # layer 1 (input size H)
        "wih1": u(ks[5], (4 * H, H), bound),
        "whh1": u(ks[6], (4 * H, H), bound),
        "bih1": u(ks[7], (4 * H,), bound),
        "bhh1": u(ks[8], (4 * H,), bound),
        # fc
        "w_fc": u(ks[9], (O, H), bound),
        "b_fc": u(ks[10], (O,), bound),
    }


# ----------------------------------------------------------------------------
# Forward pass: embedding gather + big input-projection matmul in XLA glue,
# the recurrence (+ fc) in the fused Pallas kernel.
# ----------------------------------------------------------------------------
def _reorder_gate_cols(w, H):
    """Reorder the 4H gate columns from PyTorch [i, f, g, o] to [i, f, o, g]."""
    return jnp.concatenate(
        [w[..., :2 * H], w[..., 3 * H:4 * H], w[..., 2 * H:3 * H]], axis=-1)


def sentiment_lstm_forward(params, x_ids):
    H = params["whh0"].shape[-1]
    B0, T = x_ids.shape

    # Pad batch to a multiple of 8 sublanes (padded rows computed & discarded).
    B = ((B0 + 7) // 8) * 8
    if B != B0:
        x_ids = jnp.pad(x_ids, ((0, B - B0), (0, 0)))

    # Gather embeddings time-major directly: transpose the tiny int ids, not
    # the (T, B, 4H) activations -> xproj is produced time-major in one pass.
    emb_t = params["embedding"][x_ids.T]                     # (T, B, E)

    # Layer-0 input projection (+ both biases) for ALL timesteps at once.
    wih0_t = _reorder_gate_cols(params["wih0"].T, H)         # (E, 4H)
    b0 = _reorder_gate_cols(params["bih0"] + params["bhh0"], H)     # (4H,)
    xproj = jnp.einsum("tbe,eg->tbg", emb_t, wih0_t,
                       preferred_element_type=jnp.float32) + b0     # (T, B, 4H)

    # Recurrent weights for the fused kernel (f32 operands -- see header note).
    whh0_t = _reorder_gate_cols(params["whh0"].T, H)         # (H, 4H)
    wih1_t = _reorder_gate_cols(params["wih1"].T, H)         # (H, 4H)
    whh1_t = _reorder_gate_cols(params["whh1"].T, H)         # (H, 4H)
    b1 = _reorder_gate_cols(params["bih1"] + params["bhh1"], H)[None, :]
    wfc_t = params["w_fc"].T                                 # (H, O)
    bfc = params["b_fc"][None, :]                            # (1, O)

    # Fixed chunk + in-kernel guard of trailing padded steps (never tc=1).
    tc = _pick_time_chunk(T, B, H)
    T_pad = ((T + tc - 1) // tc) * tc
    if T_pad != T:
        xproj = jnp.pad(xproj, ((0, T_pad - T), (0, 0), (0, 0)))

    # inter-layer dropout (p=0.5) and self.dropout (p=0.3) are identity (eval)
    logits = fused_lstm_fc(xproj, whh0_t, wih1_t, whh1_t, b1, wfc_t, bfc,
                           tc, T)                            # (B, O)
    return logits[:B0]


# ----------------------------------------------------------------------------
# Pure-JAX reference (mirrors the PyTorch module) for a correctness check.
# ----------------------------------------------------------------------------
def sentiment_lstm_reference(params, x_ids):
    H = params["whh0"].shape[-1]
    emb = params["embedding"][x_ids]                         # (B, T, E)

    def lstm_layer(xs, wih, whh, bih, bhh):
        B = xs.shape[0]

        def step(carry, x_t):
            h, c = carry
            gates = x_t @ wih.T + bih + h @ whh.T + bhh
            i, f, g, o = jnp.split(gates, 4, axis=-1)
            i, f, o = jax.nn.sigmoid(i), jax.nn.sigmoid(f), jax.nn.sigmoid(o)
            g = jnp.tanh(g)
            c = f * c + i * g
            h = o * jnp.tanh(c)
            return (h, c), h

        init = (jnp.zeros((B, H), jnp.float32), jnp.zeros((B, H), jnp.float32))
        _, hs = jax.lax.scan(step, init, jnp.swapaxes(xs, 0, 1))
        return jnp.swapaxes(hs, 0, 1)                        # (B, T, H)

    h1 = lstm_layer(emb, params["wih0"], params["whh0"],
                    params["bih0"], params["bhh0"])
    h2 = lstm_layer(h1, params["wih1"], params["whh1"],
                    params["bih1"], params["bhh1"])
    return h2[:, -1, :] @ params["w_fc"].T + params["b_fc"]


if __name__ == "__main__":
    VOCAB, E, H, O = 100, 32, 32, 2
    B, T = 2, 8

    key = jax.random.PRNGKey(0)
    k_params, k_data = jax.random.split(key)
    params = init_params(k_params, VOCAB, E, H, O)
    x_ids = jax.random.randint(k_data, (B, T), 0, VOCAB)     # token ids

    out = jax.jit(sentiment_lstm_forward)(params, x_ids)
    jax.block_until_ready(out)
    assert out.shape == (B, O)

    ref = sentiment_lstm_reference(params, x_ids)
    assert jnp.allclose(out, ref, rtol=1e-3, atol=1e-3), (out, ref)
    print("KERNEL_OK")
</pallas_src>

<mosaic_0001>
module attributes {stable_mosaic.version = 11 : i64} {
  func.func @fused_lstm_fc_kernel(%arg0: i32, %arg1: memref<8x8x128xf32, #tpu.memory_space<vmem>>, %arg2: memref<32x128xf32, #tpu.memory_space<vmem>>, %arg3: memref<32x128xf32, #tpu.memory_space<vmem>>, %arg4: memref<32x128xf32, #tpu.memory_space<vmem>>, %arg5: memref<1x128xf32, #tpu.memory_space<vmem>>, %arg6: memref<32x2xf32, #tpu.memory_space<vmem>>, %arg7: memref<1x2xf32, #tpu.memory_space<vmem>>, %arg8: memref<8x2xf32, #tpu.memory_space<vmem>>, %arg9: memref<8x32xf32, #tpu.memory_space<vmem>>, %arg10: memref<8x32xf32, #tpu.memory_space<vmem>>, %arg11: memref<8x32xf32, #tpu.memory_space<vmem>>, %arg12: memref<8x32xf32, #tpu.memory_space<vmem>>) attributes {dimension_semantics = [#tpu.dimension_semantics<arbitrary>], iteration_bounds = array<i64: 1>, scalar_prefetch = 0 : i64, scratch_operands = 4 : i64, tpu.core_type = #tpu.core_type<tc>, window_params = [{transform_indices = @transform_0, window_bounds = array<i64: 8, 8, 128>}, {pipeline_mode = #tpu.pipeline_mode<synchronous>, transform_indices = @transform_1, window_bounds = array<i64: 32, 128>}, {pipeline_mode = #tpu.pipeline_mode<synchronous>, transform_indices = @transform_2, window_bounds = array<i64: 32, 128>}, {pipeline_mode = #tpu.pipeline_mode<synchronous>, transform_indices = @transform_3, window_bounds = array<i64: 32, 128>}, {pipeline_mode = #tpu.pipeline_mode<synchronous>, transform_indices = @transform_4, window_bounds = array<i64: 1, 128>}, {pipeline_mode = #tpu.pipeline_mode<synchronous>, transform_indices = @transform_5, window_bounds = array<i64: 32, 2>}, {pipeline_mode = #tpu.pipeline_mode<synchronous>, transform_indices = @transform_6, window_bounds = array<i64: 1, 2>}, {pipeline_mode = #tpu.pipeline_mode<synchronous>, transform_indices = @transform_7, window_bounds = array<i64: 8, 2>}]} {
    %c0_i32 = arith.constant 0 : i32
    %0 = arith.cmpi eq, %arg0, %c0_i32 : i32
    %1 = arith.extui %0 : i1 to i32
    %c0_i32_0 = arith.constant 0 : i32
    %2 = arith.cmpi ne, %1, %c0_i32_0 : i32
    scf.if %2 {
      %cst_82 = arith.constant 0.000000e+00 : f32
      %348 = vector.broadcast %cst_82 : f32 to vector<8x32xf32>
      %c0_83 = arith.constant 0 : index
      %c0_84 = arith.constant 0 : index
      %349 = vector.load %arg9[%c0_83, %c0_84] : memref<8x32xf32, #tpu.memory_space<vmem>>, vector<8x32xf32>
      tpu.vector_store %arg9[%c0_83, %c0_84], %348 {strides = array<i32>} : memref<8x32xf32, #tpu.memory_space<vmem>>, vector<8x32xf32>,
      %cst_85 = arith.constant 0.000000e+00 : f32
      %350 = vector.broadcast %cst_85 : f32 to vector<8x32xf32>
      %c0_86 = arith.constant 0 : index
      %c0_87 = arith.constant 0 : index
      %351 = vector.load %arg10[%c0_86, %c0_87] : memref<8x32xf32, #tpu.memory_space<vmem>>, vector<8x32xf32>
      tpu.vector_store %arg10[%c0_86, %c0_87], %350 {strides = array<i32>} : memref<8x32xf32, #tpu.memory_space<vmem>>, vector<8x32xf32>,
      %cst_88 = arith.constant 0.000000e+00 : f32
      %352 = vector.broadcast %cst_88 : f32 to vector<8x32xf32>
      %c0_89 = arith.constant 0 : index
      %c0_90 = arith.constant 0 : index
      %353 = vector.load %arg11[%c0_89, %c0_90] : memref<8x32xf32, #tpu.memory_space<vmem>>, vector<8x32xf32>
      tpu.vector_store %arg11[%c0_89, %c0_90], %352 {strides = array<i32>} : memref<8x32xf32, #tpu.memory_space<vmem>>, vector<8x32xf32>,
      %cst_91 = arith.constant 0.000000e+00 : f32
      %354 = vector.broadcast %cst_91 : f32 to vector<8x32xf32>
      %c0_92 = arith.constant 0 : index
      %c0_93 = arith.constant 0 : index
      %355 = vector.load %arg12[%c0_92, %c0_93] : memref<8x32xf32, #tpu.memory_space<vmem>>, vector<8x32xf32>
      tpu.vector_store %arg12[%c0_92, %c0_93], %354 {strides = array<i32>} : memref<8x32xf32, #tpu.memory_space<vmem>>, vector<8x32xf32>,
    } else {
    }
    %c0 = arith.constant 0 : index
    %c0_1 = arith.constant 0 : index
    %3 = vector.load %arg2[%c0, %c0_1] : memref<32x128xf32, #tpu.memory_space<vmem>>, vector<32x128xf32>
    %c0_2 = arith.constant 0 : index
    %c0_3 = arith.constant 0 : index
    %4 = vector.load %arg3[%c0_2, %c0_3] : memref<32x128xf32, #tpu.memory_space<vmem>>, vector<32x128xf32>
    %c0_4 = arith.constant 0 : index
    %c0_5 = arith.constant 0 : index
    %5 = vector.load %arg4[%c0_4, %c0_5] : memref<32x128xf32, #tpu.memory_space<vmem>>, vector<32x128xf32>
    %c0_6 = arith.constant 0 : index
    %c0_7 = arith.constant 0 : index
    %6 = vector.load %arg5[%c0_6, %c0_7] : memref<1x128xf32, #tpu.memory_space<vmem>>, vector<1x128xf32>
    %7 = vector.shape_cast %6 : vector<1x128xf32> to vector<1x128xf32>
    %8 = vector.broadcast %7 : vector<1x128xf32> to vector<8x128xf32>
    %c0_8 = arith.constant 0 : index
    %c0_9 = arith.constant 0 : index
    %9 = vector.load %arg9[%c0_8, %c0_9] : memref<8x32xf32, #tpu.memory_space<vmem>>, vector<8x32xf32>
    %c0_10 = arith.constant 0 : index
    %c0_11 = arith.constant 0 : index
    %10 = vector.load %arg10[%c0_10, %c0_11] : memref<8x32xf32, #tpu.memory_space<vmem>>, vector<8x32xf32>
    %c0_12 = arith.constant 0 : index
    %c0_13 = arith.constant 0 : index
    %11 = vector.load %arg11[%c0_12, %c0_13] : memref<8x32xf32, #tpu.memory_space<vmem>>, vector<8x32xf32>
    %c0_14 = arith.constant 0 : index
    %c0_15 = arith.constant 0 : index
    %12 = vector.load %arg12[%c0_14, %c0_15] : memref<8x32xf32, #tpu.memory_space<vmem>>, vector<8x32xf32>
    %c0_i32_16 = arith.constant 0 : i32
    %13 = arith.index_cast %c0_i32_16 : i32 to index
    %c0_17 = arith.constant 0 : index
    %c0_18 = arith.constant 0 : index
    %14 = vector.load %arg1[%13, %c0_17, %c0_18] : memref<8x8x128xf32, #tpu.memory_space<vmem>>, vector<1x8x128xf32>
    %15 = vector.shape_cast %14 : vector<1x8x128xf32> to vector<8x128xf32>
    %cst = arith.constant dense<0.000000e+00> : vector<8x128xf32>
    %16 = tpu.matmul %9, %3, %cst {dimension_numbers = #tpu.dot_dimension_numbers<[1], [0], [0], [1], [0, 0, 1, 1], [], []>} : vector<8x32xf32>, vector<32x128xf32>, vector<8x128xf32> -> vector<8x128xf32>
    %17 = arith.addf %15, %16 : vector<8x128xf32>
    %18 = vector.extract_strided_slice %17 {offsets = [0, 0], sizes = [8, 96], strides = [1, 1]} : vector<8x128xf32> to vector<8x96xf32>
    %19 = arith.negf %18 : vector<8x96xf32>
    %20 = math.exp %19 : vector<8x96xf32>
    %cst_19 = arith.constant 1.000000e+00 : f32
    %21 = vector.broadcast %cst_19 : f32 to vector<8x96xf32>
    %22 = arith.addf %21, %20 : vector<8x96xf32>
    %23 = arith.divf %21, %22 : vector<8x96xf32>
    %24 = vector.extract_strided_slice %17 {offsets = [0, 96], sizes = [8, 32], strides = [1, 1]} : vector<8x128xf32> to vector<8x32xf32>
    %25 = math.tanh %24 : vector<8x32xf32>
    %26 = vector.extract_strided_slice %23 {offsets = [0, 0], sizes = [8, 32], strides = [1, 1]} : vector<8x96xf32> to vector<8x32xf32>
    %27 = vector.extract_strided_slice %23 {offsets = [0, 32], sizes = [8, 32], strides = [1, 1]} : vector<8x96xf32> to vector<8x32xf32>
    %28 = vector.extract_strided_slice %23 {offsets = [0, 64], sizes = [8, 32], strides = [1, 1]} : vector<8x96xf32> to vector<8x32xf32>
    %29 = arith.mulf %27, %10 : vector<8x32xf32>
    %30 = arith.mulf %26, %25 : vector<8x32xf32>
    %31 = arith.addf %29, %30 : vector<8x32xf32>
    %32 = math.tanh %31 : vector<8x32xf32>
    %33 = arith.mulf %28, %32 : vector<8x32xf32>
    %cst_20 = arith.constant dense<0.000000e+00> : vector<8x128xf32>
    %34 = tpu.matmul %33, %4, %cst_20 {dimension_numbers = #tpu.dot_dimension_numbers<[1], [0], [0], [1], [0, 0, 1, 1], [], []>} : vector<8x32xf32>, vector<32x128xf32>, vector<8x128xf32> -> vector<8x128xf32>
    %35 = arith.addf %8, %34 : vector<8x128xf32>
    %cst_21 = arith.constant dense<0.000000e+00> : vector<8x128xf32>
    %36 = tpu.matmul %11, %5, %cst_21 {dimension_numbers = #tpu.dot_dimension_numbers<[1], [0], [0], [1], [0, 0, 1, 1], [], []>} : vector<8x32xf32>, vector<32x128xf32>, vector<8x128xf32> -> vector<8x128xf32>
    %37 = arith.addf %35, %36 : vector<8x128xf32>
    %38 = vector.extract_strided_slice %37 {offsets = [0, 0], sizes = [8, 96], strides = [1, 1]} : vector<8x128xf32> to vector<8x96xf32>
    %39 = arith.negf %38 : vector<8x96xf32>
    %40 = math.exp %39 : vector<8x96xf32>
    %cst_22 = arith.constant 1.000000e+00 : f32
    %41 = vector.broadcast %cst_22 : f32 to vector<8x96xf32>
    %42 = arith.addf %41, %40 : vector<8x96xf32>
    %43 = arith.divf %41, %42 : vector<8x96xf32>
    %44 = vector.extract_strided_slice %37 {offsets = [0, 96], sizes = [8, 32], strides = [1, 1]} : vector<8x128xf32> to vector<8x32xf32>
    %45 = math.tanh %44 : vector<8x32xf32>
    %46 = vector.extract_strided_slice %43 {offsets = [0, 0], sizes = [8, 32], strides = [1, 1]} : vector<8x96xf32> to vector<8x32xf32>
    %47 = vector.extract_strided_slice %43 {offsets = [0, 32], sizes = [8, 32], strides = [1, 1]} : vector<8x96xf32> to vector<8x32xf32>
    %48 = vector.extract_strided_slice %43 {offsets = [0, 64], sizes = [8, 32], strides = [1, 1]} : vector<8x96xf32> to vector<8x32xf32>
    %49 = arith.mulf %47, %12 : vector<8x32xf32>
    %50 = arith.mulf %46, %45 : vector<8x32xf32>
    %51 = arith.addf %49, %50 : vector<8x32xf32>
    %52 = math.tanh %51 : vector<8x32xf32>
    %53 = arith.mulf %48, %52 : vector<8x32xf32>
    %c1_i32 = arith.constant 1 : i32
    %54 = arith.index_cast %c1_i32 : i32 to index
    %c0_23 = arith.constant 0 : index
    %c0_24 = arith.constant 0 : index
    %55 = vector.load %arg1[%54, %c0_23, %c0_24] : memref<8x8x128xf32, #tpu.memory_space<vmem>>, vector<1x8x128xf32>
    %56 = vector.shape_cast %55 : vector<1x8x128xf32> to vector<8x128xf32>
    %cst_25 = arith.constant dense<0.000000e+00> : vector<8x128xf32>
    %57 = tpu.matmul %33, %3, %cst_25 {dimension_numbers = #tpu.dot_dimension_numbers<[1], [0], [0], [1], [0, 0, 1, 1], [], []>} : vector<8x32xf32>, vector<32x128xf32>, vector<8x128xf32> -> vector<8x128xf32>
    %58 = arith.addf %56, %57 : vector<8x128xf32>
    %59 = vector.extract_strided_slice %58 {offsets = [0, 0], sizes = [8, 96], strides = [1, 1]} : vector<8x128xf32> to vector<8x96xf32>
    %60 = arith.negf %59 : vector<8x96xf32>
    %61 = math.exp %60 : vector<8x96xf32>
    %cst_26 = arith.constant 1.000000e+00 : f32
    %62 = vector.broadcast %cst_26 : f32 to vector<8x96xf32>
    %63 = arith.addf %62, %61 : vector<8x96xf32>
    %64 = arith.divf %62, %63 : vector<8x96xf32>
    %65 = vector.extract_strided_slice %58 {offsets = [0, 96], sizes = [8, 32], strides = [1, 1]} : vector<8x128xf32> to vector<8x32xf32>
    %66 = math.tanh %65 : vector<8x32xf32>
    %67 = vector.extract_strided_slice %64 {offsets = [0, 0], sizes = [8, 32], strides = [1, 1]} : vector<8x96xf32> to vector<8x32xf32>
    %68 = vector.extract_strided_slice %64 {offsets = [0, 32], sizes = [8, 32], strides = [1, 1]} : vector<8x96xf32> to vector<8x32xf32>
    %69 = vector.extract_strided_slice %64 {offsets = [0, 64], sizes = [8, 32], strides = [1, 1]} : vector<8x96xf32> to vector<8x32xf32>
    %70 = arith.mulf %68, %31 : vector<8x32xf32>
    %71 = arith.mulf %67, %66 : vector<8x32xf32>
    %72 = arith.addf %70, %71 : vector<8x32xf32>
    %73 = math.tanh %72 : vector<8x32xf32>
    %74 = arith.mulf %69, %73 : vector<8x32xf32>
    %cst_27 = arith.constant dense<0.000000e+00> : vector<8x128xf32>
    %75 = tpu.matmul %74, %4, %cst_27 {dimension_numbers = #tpu.dot_dimension_numbers<[1], [0], [0], [1], [0, 0, 1, 1], [], []>} : vector<8x32xf32>, vector<32x128xf32>, vector<8x128xf32> -> vector<8x128xf32>
    %76 = arith.addf %8, %75 : vector<8x128xf32>
    %cst_28 = arith.constant dense<0.000000e+00> : vector<8x128xf32>
    %77 = tpu.matmul %53, %5, %cst_28 {dimension_numbers = #tpu.dot_dimension_numbers<[1], [0], [0], [1], [0, 0, 1, 1], [], []>} : vector<8x32xf32>, vector<32x128xf32>, vector<8x128xf32> -> vector<8x128xf32>
    %78 = arith.addf %76, %77 : vector<8x128xf32>
    %79 = vector.extract_strided_slice %78 {offsets = [0, 0], sizes = [8, 96], strides = [1, 1]} : vector<8x128xf32> to vector<8x96xf32>
    %80 = arith.negf %79 : vector<8x96xf32>
    %81 = math.exp %80 : vector<8x96xf32>
    %cst_29 = arith.constant 1.000000e+00 : f32
    %82 = vector.broadcast %cst_29 : f32 to vector<8x96xf32>
    %83 = arith.addf %82, %81 : vector<8x96xf32>
    %84 = arith.divf %82, %83 : vector<8x96xf32>
    %85 = vector.extract_strided_slice %78 {offsets = [0, 96], sizes = [8, 32], strides = [1, 1]} : vector<8x128xf32> to vector<8x32xf32>
    %86 = math.tanh %85 : vector<8x32xf32>
    %87 = vector.extract_strided_slice %84 {offsets = [0, 0], sizes = [8, 32], strides = [1, 1]} : vector<8x96xf32> to vector<8x32xf32>
    %88 = vector.extract_strided_slice %84 {offsets = [0, 32], sizes = [8, 32], strides = [1, 1]} : vector<8x96xf32> to vector<8x32xf32>
    %89 = vector.extract_strided_slice %84 {offsets = [0, 64], sizes = [8, 32], strides = [1, 1]} : vector<8x96xf32> to vector<8x32xf32>
    %90 = arith.mulf %88, %51 : vector<8x32xf32>
    %91 = arith.mulf %87, %86 : vector<8x32xf32>
    %92 = arith.addf %90, %91 : vector<8x32xf32>
    %93 = math.tanh %92 : vector<8x32xf32>
    %94 = arith.mulf %89, %93 : vector<8x32xf32>
    %c2_i32 = arith.constant 2 : i32
    %95 = arith.index_cast %c2_i32 : i32 to index
    %c0_30 = arith.constant 0 : index
    %c0_31 = arith.constant 0 : index
    %96 = vector.load %arg1[%95, %c0_30, %c0_31] : memref<8x8x128xf32, #tpu.memory_space<vmem>>, vector<1x8x128xf32>
    %97 = vector.shape_cast %96 : vector<1x8x128xf32> to vector<8x128xf32>
    %cst_32 = arith.constant dense<0.000000e+00> : vector<8x128xf32>
    %98 = tpu.matmul %74, %3, %cst_32 {dimension_numbers = #tpu.dot_dimension_numbers<[1], [0], [0], [1], [0, 0, 1, 1], [], []>} : vector<8x32xf32>, vector<32x128xf32>, vector<8x128xf32> -> vector<8x128xf32>
    %99 = arith.addf %97, %98 : vector<8x128xf32>
    %100 = vector.extract_strided_slice %99 {offsets = [0, 0], sizes = [8, 96], strides = [1, 1]} : vector<8x128xf32> to vector<8x96xf32>
    %101 = arith.negf %100 : vector<8x96xf32>
    %102 = math.exp %101 : vector<8x96xf32>
    %cst_33 = arith.constant 1.000000e+00 : f32
    %103 = vector.broadcast %cst_33 : f32 to vector<8x96xf32>
    %104 = arith.addf %103, %102 : vector<8x96xf32>
    %105 = arith.divf %103, %104 : vector<8x96xf32>
    %106 = vector.extract_strided_slice %99 {offsets = [0, 96], sizes = [8, 32], strides = [1, 1]} : vector<8x128xf32> to vector<8x32xf32>
    %107 = math.tanh %106 : vector<8x32xf32>
    %108 = vector.extract_strided_slice %105 {offsets = [0, 0], sizes = [8, 32], strides = [1, 1]} : vector<8x96xf32> to vector<8x32xf32>
    %109 = vector.extract_strided_slice %105 {offsets = [0, 32], sizes = [8, 32], strides = [1, 1]} : vector<8x96xf32> to vector<8x32xf32>
    %110 = vector.extract_strided_slice %105 {offsets = [0, 64], sizes = [8, 32], strides = [1, 1]} : vector<8x96xf32> to vector<8x32xf32>
    %111 = arith.mulf %109, %72 : vector<8x32xf32>
    %112 = arith.mulf %108, %107 : vector<8x32xf32>
    %113 = arith.addf %111, %112 : vector<8x32xf32>
    %114 = math.tanh %113 : vector<8x32xf32>
    %115 = arith.mulf %110, %114 : vector<8x32xf32>
    %cst_34 = arith.constant dense<0.000000e+00> : vector<8x128xf32>
    %116 = tpu.matmul %115, %4, %cst_34 {dimension_numbers = #tpu.dot_dimension_numbers<[1], [0], [0], [1], [0, 0, 1, 1], [], []>} : vector<8x32xf32>, vector<32x128xf32>, vector<8x128xf32> -> vector<8x128xf32>
    %117 = arith.addf %8, %116 : vector<8x128xf32>
    %cst_35 = arith.constant dense<0.000000e+00> : vector<8x128xf32>
    %118 = tpu.matmul %94, %5, %cst_35 {dimension_numbers = #tpu.dot_dimension_numbers<[1], [0], [0], [1], [0, 0, 1, 1], [], []>} : vector<8x32xf32>, vector<32x128xf32>, vector<8x128xf32> -> vector<8x128xf32>
    %119 = arith.addf %117, %118 : vector<8x128xf32>
    %120 = vector.extract_strided_slice %119 {offsets = [0, 0], sizes = [8, 96], strides = [1, 1]} : vector<8x128xf32> to vector<8x96xf32>
    %121 = arith.negf %120 : vector<8x96xf32>
    %122 = math.exp %121 : vector<8x96xf32>
    %cst_36 = arith.constant 1.000000e+00 : f32
    %123 = vector.broadcast %cst_36 : f32 to vector<8x96xf32>
    %124 = arith.addf %123, %122 : vector<8x96xf32>
    %125 = arith.divf %123, %124 : vector<8x96xf32>
    %126 = vector.extract_strided_slice %119 {offsets = [0, 96], sizes = [8, 32], strides = [1, 1]} : vector<8x128xf32> to vector<8x32xf32>
    %127 = math.tanh %126 : vector<8x32xf32>
    %128 = vector.extract_strided_slice %125 {offsets = [0, 0], sizes = [8, 32], strides = [1, 1]} : vector<8x96xf32> to vector<8x32xf32>
    %129 = vector.extract_strided_slice %125 {offsets = [0, 32], sizes = [8, 32], strides = [1, 1]} : vector<8x96xf32> to vector<8x32xf32>
    %130 = vector.extract_strided_slice %125 {offsets = [0, 64], sizes = [8, 32], strides = [1, 1]} : vector<8x96xf32> to vector<8x32xf32>
    %131 = arith.mulf %129, %92 : vector<8x32xf32>
    %132 = arith.mulf %128, %127 : vector<8x32xf32>
    %133 = arith.addf %131, %132 : vector<8x32xf32>
    %134 = math.tanh %133 : vector<8x32xf32>
    %135 = arith.mulf %130, %134 : vector<8x32xf32>
    %c3_i32 = arith.constant 3 : i32
    %136 = arith.index_cast %c3_i32 : i32 to index
    %c0_37 = arith.constant 0 : index
    %c0_38 = arith.constant 0 : index
    %137 = vector.load %arg1[%136, %c0_37, %c0_38] : memref<8x8x128xf32, #tpu.memory_space<vmem>>, vector<1x8x128xf32>
    %138 = vector.shape_cast %137 : vector<1x8x128xf32> to vector<8x128xf32>
    %cst_39 = arith.constant dense<0.000000e+00> : vector<8x128xf32>
    %139 = tpu.matmul %115, %3, %cst_39 {dimension_numbers = #tpu.dot_dimension_numbers<[1], [0], [0], [1], [0, 0, 1, 1], [], []>} : vector<8x32xf32>, vector<32x128xf32>, vector<8x128xf32> -> vector<8x128xf32>
    %140 = arith.addf %138, %139 : vector<8x128xf32>
    %141 = vector.extract_strided_slice %140 {offsets = [0, 0], sizes = [8, 96], strides = [1, 1]} : vector<8x128xf32> to vector<8x96xf32>
    %142 = arith.negf %141 : vector<8x96xf32>
    %143 = math.exp %142 : vector<8x96xf32>
    %cst_40 = arith.constant 1.000000e+00 : f32
    %144 = vector.broadcast %cst_40 : f32 to vector<8x96xf32>
    %145 = arith.addf %144, %143 : vector<8x96xf32>
    %146 = arith.divf %144, %145 : vector<8x96xf32>
    %147 = vector.extract_strided_slice %140 {offsets = [0, 96], sizes = [8, 32], strides = [1, 1]} : vector<8x128xf32> to vector<8x32xf32>
    %148 = math.tanh %147 : vector<8x32xf32>
    %149 = vector.extract_strided_slice %146 {offsets = [0, 0], sizes = [8, 32], strides = [1, 1]} : vector<8x96xf32> to vector<8x32xf32>
    %150 = vector.extract_strided_slice %146 {offsets = [0, 32], sizes = [8, 32], strides = [1, 1]} : vector<8x96xf32> to vector<8x32xf32>
    %151 = vector.extract_strided_slice %146 {offsets = [0, 64], sizes = [8, 32], strides = [1, 1]} : vector<8x96xf32> to vector<8x32xf32>
    %152 = arith.mulf %150, %113 : vector<8x32xf32>
    %153 = arith.mulf %149, %148 : vector<8x32xf32>
    %154 = arith.addf %152, %153 : vector<8x32xf32>
    %155 = math.tanh %154 : vector<8x32xf32>
    %156 = arith.mulf %151, %155 : vector<8x32xf32>
    %cst_41 = arith.constant dense<0.000000e+00> : vector<8x128xf32>
    %157 = tpu.matmul %156, %4, %cst_41 {dimension_numbers = #tpu.dot_dimension_numbers<[1], [0], [0], [1], [0, 0, 1, 1], [], []>} : vector<8x32xf32>, vector<32x128xf32>, vector<8x128xf32> -> vector<8x128xf32>
    %158 = arith.addf %8, %157 : vector<8x128xf32>
    %cst_42 = arith.constant dense<0.000000e+00> : vector<8x128xf32>
    %159 = tpu.matmul %135, %5, %cst_42 {dimension_numbers = #tpu.dot_dimension_numbers<[1], [0], [0], [1], [0, 0, 1, 1], [], []>} : vector<8x32xf32>, vector<32x128xf32>, vector<8x128xf32> -> vector<8x128xf32>
    %160 = arith.addf %158, %159 : vector<8x128xf32>
    %161 = vector.extract_strided_slice %160 {offsets = [0, 0], sizes = [8, 96], strides = [1, 1]} : vector<8x128xf32> to vector<8x96xf32>
    %162 = arith.negf %161 : vector<8x96xf32>
    %163 = math.exp %162 : vector<8x96xf32>
    %cst_43 = arith.constant 1.000000e+00 : f32
    %164 = vector.broadcast %cst_43 : f32 to vector<8x96xf32>
    %165 = arith.addf %164, %163 : vector<8x96xf32>
    %166 = arith.divf %164, %165 : vector<8x96xf32>
    %167 = vector.extract_strided_slice %160 {offsets = [0, 96], sizes = [8, 32], strides = [1, 1]} : vector<8x128xf32> to vector<8x32xf32>
    %168 = math.tanh %167 : vector<8x32xf32>
    %169 = vector.extract_strided_slice %166 {offsets = [0, 0], sizes = [8, 32], strides = [1, 1]} : vector<8x96xf32> to vector<8x32xf32>
    %170 = vector.extract_strided_slice %166 {offsets = [0, 32], sizes = [8, 32], strides = [1, 1]} : vector<8x96xf32> to vector<8x32xf32>
    %171 = vector.extract_strided_slice %166 {offsets = [0, 64], sizes = [8, 32], strides = [1, 1]} : vector<8x96xf32> to vector<8x32xf32>
    %172 = arith.mulf %170, %133 : vector<8x32xf32>
    %173 = arith.mulf %169, %168 : vector<8x32xf32>
    %174 = arith.addf %172, %173 : vector<8x32xf32>
    %175 = math.tanh %174 : vector<8x32xf32>
    %176 = arith.mulf %171, %175 : vector<8x32xf32>
    %c4_i32 = arith.constant 4 : i32
    %177 = arith.index_cast %c4_i32 : i32 to index
    %c0_44 = arith.constant 0 : index
    %c0_45 = arith.constant 0 : index
    %178 = vector.load %arg1[%177, %c0_44, %c0_45] : memref<8x8x128xf32, #tpu.memory_space<vmem>>, vector<1x8x128xf32>
    %179 = vector.shape_cast %178 : vector<1x8x128xf32> to vector<8x128xf32>
    %cst_46 = arith.constant dense<0.000000e+00> : vector<8x128xf32>
    %180 = tpu.matmul %156, %3, %cst_46 {dimension_numbers = #tpu.dot_dimension_numbers<[1], [0], [0], [1], [0, 0, 1, 1], [], []>} : vector<8x32xf32>, vector<32x128xf32>, vector<8x128xf32> -> vector<8x128xf32>
    %181 = arith.addf %179, %180 : vector<8x128xf32>
    %182 = vector.extract_strided_slice %181 {offsets = [0, 0], sizes = [8, 96], strides = [1, 1]} : vector<8x128xf32> to vector<8x96xf32>
    %183 = arith.negf %182 : vector<8x96xf32>
    %184 = math.exp %183 : vector<8x96xf32>
    %cst_47 = arith.constant 1.000000e+00 : f32
    %185 = vector.broadcast %cst_47 : f32 to vector<8x96xf32>
    %186 = arith.addf %185, %184 : vector<8x96xf32>
    %187 = arith.divf %185, %186 : vector<8x96xf32>
    %188 = vector.extract_strided_slice %181 {offsets = [0, 96], sizes = [8, 32], strides = [1, 1]} : vector<8x128xf32> to vector<8x32xf32>
    %189 = math.tanh %188 : vector<8x32xf32>
    %190 = vector.extract_strided_slice %187 {offsets = [0, 0], sizes = [8, 32], strides = [1, 1]} : vector<8x96xf32> to vector<8x32xf32>
    %191 = vector.extract_strided_slice %187 {offsets = [0, 32], sizes = [8, 32], strides = [1, 1]} : vector<8x96xf32> to vector<8x32xf32>
    %192 = vector.extract_strided_slice %187 {offsets = [0, 64], sizes = [8, 32], strides = [1, 1]} : vector<8x96xf32> to vector<8x32xf32>
    %193 = arith.mulf %191, %154 : vector<8x32xf32>
    %194 = arith.mulf %190, %189 : vector<8x32xf32>
    %195 = arith.addf %193, %194 : vector<8x32xf32>
    %196 = math.tanh %195 : vector<8x32xf32>
    %197 = arith.mulf %192, %196 : vector<8x32xf32>
    %cst_48 = arith.constant dense<0.000000e+00> : vector<8x128xf32>
    %198 = tpu.matmul %197, %4, %cst_48 {dimension_numbers = #tpu.dot_dimension_numbers<[1], [0], [0], [1], [0, 0, 1, 1], [], []>} : vector<8x32xf32>, vector<32x128xf32>, vector<8x128xf32> -> vector<8x128xf32>
    %199 = arith.addf %8, %198 : vector<8x128xf32>
    %cst_49 = arith.constant dense<0.000000e+00> : vector<8x128xf32>
    %200 = tpu.matmul %176, %5, %cst_49 {dimension_numbers = #tpu.dot_dimension_numbers<[1], [0], [0], [1], [0, 0, 1, 1], [], []>} : vector<8x32xf32>, vector<32x128xf32>, vector<8x128xf32> -> vector<8x128xf32>
    %201 = arith.addf %199, %200 : vector<8x128xf32>
    %202 = vector.extract_strided_slice %201 {offsets = [0, 0], sizes = [8, 96], strides = [1, 1]} : vector<8x128xf32> to vector<8x96xf32>
    %203 = arith.negf %202 : vector<8x96xf32>
    %204 = math.exp %203 : vector<8x96xf32>
    %cst_50 = arith.constant 1.000000e+00 : f32
    %205 = vector.broadcast %cst_50 : f32 to vector<8x96xf32>
    %206 = arith.addf %205, %204 : vector<8x96xf32>
    %207 = arith.divf %205, %206 : vector<8x96xf32>
    %208 = vector.extract_strided_slice %201 {offsets = [0, 96], sizes = [8, 32], strides = [1, 1]} : vector<8x128xf32> to vector<8x32xf32>
    %209 = math.tanh %208 : vector<8x32xf32>
    %210 = vector.extract_strided_slice %207 {offsets = [0, 0], sizes = [8, 32], strides = [1, 1]} : vector<8x96xf32> to vector<8x32xf32>
    %211 = vector.extract_strided_slice %207 {offsets = [0, 32], sizes = [8, 32], strides = [1, 1]} : vector<8x96xf32> to vector<8x32xf32>
    %212 = vector.extract_strided_slice %207 {offsets = [0, 64], sizes = [8, 32], strides = [1, 1]} : vector<8x96xf32> to vector<8x32xf32>
    %213 = arith.mulf %211, %174 : vector<8x32xf32>
    %214 = arith.mulf %210, %209 : vector<8x32xf32>
    %215 = arith.addf %213, %214 : vector<8x32xf32>
    %216 = math.tanh %215 : vector<8x32xf32>
    %217 = arith.mulf %212, %216 : vector<8x32xf32>
    %c5_i32 = arith.constant 5 : i32
    %218 = arith.index_cast %c5_i32 : i32 to index
    %c0_51 = arith.constant 0 : index
    %c0_52 = arith.constant 0 : index
    %219 = vector.load %arg1[%218, %c0_51, %c0_52] : memref<8x8x128xf32, #tpu.memory_space<vmem>>, vector<1x8x128xf32>
    %220 = vector.shape_cast %219 : vector<1x8x128xf32> to vector<8x128xf32>
    %cst_53 = arith.constant dense<0.000000e+00> : vector<8x128xf32>
    %221 = tpu.matmul %197, %3, %cst_53 {dimension_numbers = #tpu.dot_dimension_numbers<[1], [0], [0], [1], [0, 0, 1, 1], [], []>} : vector<8x32xf32>, vector<32x128xf32>, vector<8x128xf32> -> vector<8x128xf32>
    %222 = arith.addf %220, %221 : vector<8x128xf32>
    %223 = vector.extract_strided_slice %222 {offsets = [0, 0], sizes = [8, 96], strides = [1, 1]} : vector<8x128xf32> to vector<8x96xf32>
    %224 = arith.negf %223 : vector<8x96xf32>
    %225 = math.exp %224 : vector<8x96xf32>
    %cst_54 = arith.constant 1.000000e+00 : f32
    %226 = vector.broadcast %cst_54 : f32 to vector<8x96xf32>
    %227 = arith.addf %226, %225 : vector<8x96xf32>
    %228 = arith.divf %226, %227 : vector<8x96xf32>
    %229 = vector.extract_strided_slice %222 {offsets = [0, 96], sizes = [8, 32], strides = [1, 1]} : vector<8x128xf32> to vector<8x32xf32>
    %230 = math.tanh %229 : vector<8x32xf32>
    %231 = vector.extract_strided_slice %228 {offsets = [0, 0], sizes = [8, 32], strides = [1, 1]} : vector<8x96xf32> to vector<8x32xf32>
    %232 = vector.extract_strided_slice %228 {offsets = [0, 32], sizes = [8, 32], strides = [1, 1]} : vector<8x96xf32> to vector<8x32xf32>
    %233 = vector.extract_strided_slice %228 {offsets = [0, 64], sizes = [8, 32], strides = [1, 1]} : vector<8x96xf32> to vector<8x32xf32>
    %234 = arith.mulf %232, %195 : vector<8x32xf32>
    %235 = arith.mulf %231, %230 : vector<8x32xf32>
    %236 = arith.addf %234, %235 : vector<8x32xf32>
    %237 = math.tanh %236 : vector<8x32xf32>
    %238 = arith.mulf %233, %237 : vector<8x32xf32>
    %cst_55 = arith.constant dense<0.000000e+00> : vector<8x128xf32>
    %239 = tpu.matmul %238, %4, %cst_55 {dimension_numbers = #tpu.dot_dimension_numbers<[1], [0], [0], [1], [0, 0, 1, 1], [], []>} : vector<8x32xf32>, vector<32x128xf32>, vector<8x128xf32> -> vector<8x128xf32>
    %240 = arith.addf %8, %239 : vector<8x128xf32>
    %cst_56 = arith.constant dense<0.000000e+00> : vector<8x128xf32>
    %241 = tpu.matmul %217, %5, %cst_56 {dimension_numbers = #tpu.dot_dimension_numbers<[1], [0], [0], [1], [0, 0, 1, 1], [], []>} : vector<8x32xf32>, vector<32x128xf32>, vector<8x128xf32> -> vector<8x128xf32>
    %242 = arith.addf %240, %241 : vector<8x128xf32>
    %243 = vector.extract_strided_slice %242 {offsets = [0, 0], sizes = [8, 96], strides = [1, 1]} : vector<8x128xf32> to vector<8x96xf32>
    %244 = arith.negf %243 : vector<8x96xf32>
    %245 = math.exp %244 : vector<8x96xf32>
    %cst_57 = arith.constant 1.000000e+00 : f32
    %246 = vector.broadcast %cst_57 : f32 to vector<8x96xf32>
    %247 = arith.addf %246, %245 : vector<8x96xf32>
    %248 = arith.divf %246, %247 : vector<8x96xf32>
    %249 = vector.extract_strided_slice %242 {offsets = [0, 96], sizes = [8, 32], strides = [1, 1]} : vector<8x128xf32> to vector<8x32xf32>
    %250 = math.tanh %249 : vector<8x32xf32>
    %251 = vector.extract_strided_slice %248 {offsets = [0, 0], sizes = [8, 32], strides = [1, 1]} : vector<8x96xf32> to vector<8x32xf32>
    %252 = vector.extract_strided_slice %248 {offsets = [0, 32], sizes = [8, 32], strides = [1, 1]} : vector<8x96xf32> to vector<8x32xf32>
    %253 = vector.extract_strided_slice %248 {offsets = [0, 64], sizes = [8, 32], strides = [1, 1]} : vector<8x96xf32> to vector<8x32xf32>
    %254 = arith.mulf %252, %215 : vector<8x32xf32>
    %255 = arith.mulf %251, %250 : vector<8x32xf32>
    %256 = arith.addf %254, %255 : vector<8x32xf32>
    %257 = math.tanh %256 : vector<8x32xf32>
    %258 = arith.mulf %253, %257 : vector<8x32xf32>
    %c6_i32 = arith.constant 6 : i32
    %259 = arith.index_cast %c6_i32 : i32 to index
    %c0_58 = arith.constant 0 : index
    %c0_59 = arith.constant 0 : index
    %260 = vector.load %arg1[%259, %c0_58, %c0_59] : memref<8x8x128xf32, #tpu.memory_space<vmem>>, vector<1x8x128xf32>
    %261 = vector.shape_cast %260 : vector<1x8x128xf32> to vector<8x128xf32>
    %cst_60 = arith.constant dense<0.000000e+00> : vector<8x128xf32>
    %262 = tpu.matmul %238, %3, %cst_60 {dimension_numbers = #tpu.dot_dimension_numbers<[1], [0], [0], [1], [0, 0, 1, 1], [], []>} : vector<8x32xf32>, vector<32x128xf32>, vector<8x128xf32> -> vector<8x128xf32>
    %263 = arith.addf %261, %262 : vector<8x128xf32>
    %264 = vector.extract_strided_slice %263 {offsets = [0, 0], sizes = [8, 96], strides = [1, 1]} : vector<8x128xf32> to vector<8x96xf32>
    %265 = arith.negf %264 : vector<8x96xf32>
    %266 = math.exp %265 : vector<8x96xf32>
    %cst_61 = arith.constant 1.000000e+00 : f32
    %267 = vector.broadcast %cst_61 : f32 to vector<8x96xf32>
    %268 = arith.addf %267, %266 : vector<8x96xf32>
    %269 = arith.divf %267, %268 : vector<8x96xf32>
    %270 = vector.extract_strided_slice %263 {offsets = [0, 96], sizes = [8, 32], strides = [1, 1]} : vector<8x128xf32> to vector<8x32xf32>
    %271 = math.tanh %270 : vector<8x32xf32>
    %272 = vector.extract_strided_slice %269 {offsets = [0, 0], sizes = [8, 32], strides = [1, 1]} : vector<8x96xf32> to vector<8x32xf32>
    %273 = vector.extract_strided_slice %269 {offsets = [0, 32], sizes = [8, 32], strides = [1, 1]} : vector<8x96xf32> to vector<8x32xf32>
    %274 = vector.extract_strided_slice %269 {offsets = [0, 64], sizes = [8, 32], strides = [1, 1]} : vector<8x96xf32> to vector<8x32xf32>
    %275 = arith.mulf %273, %236 : vector<8x32xf32>
    %276 = arith.mulf %272, %271 : vector<8x32xf32>
    %277 = arith.addf %275, %276 : vector<8x32xf32>
    %278 = math.tanh %277 : vector<8x32xf32>
    %279 = arith.mulf %274, %278 : vector<8x32xf32>
    %cst_62 = arith.constant dense<0.000000e+00> : vector<8x128xf32>
    %280 = tpu.matmul %279, %4, %cst_62 {dimension_numbers = #tpu.dot_dimension_numbers<[1], [0], [0], [1], [0, 0, 1, 1], [], []>} : vector<8x32xf32>, vector<32x128xf32>, vector<8x128xf32> -> vector<8x128xf32>
    %281 = arith.addf %8, %280 : vector<8x128xf32>
    %cst_63 = arith.constant dense<0.000000e+00> : vector<8x128xf32>
    %282 = tpu.matmul %258, %5, %cst_63 {dimension_numbers = #tpu.dot_dimension_numbers<[1], [0], [0], [1], [0, 0, 1, 1], [], []>} : vector<8x32xf32>, vector<32x128xf32>, vector<8x128xf32> -> vector<8x128xf32>
    %283 = arith.addf %281, %282 : vector<8x128xf32>
    %284 = vector.extract_strided_slice %283 {offsets = [0, 0], sizes = [8, 96], strides = [1, 1]} : vector<8x128xf32> to vector<8x96xf32>
    %285 = arith.negf %284 : vector<8x96xf32>
    %286 = math.exp %285 : vector<8x96xf32>
    %cst_64 = arith.constant 1.000000e+00 : f32
    %287 = vector.broadcast %cst_64 : f32 to vector<8x96xf32>
    %288 = arith.addf %287, %286 : vector<8x96xf32>
    %289 = arith.divf %287, %288 : vector<8x96xf32>
    %290 = vector.extract_strided_slice %283 {offsets = [0, 96], sizes = [8, 32], strides = [1, 1]} : vector<8x128xf32> to vector<8x32xf32>
    %291 = math.tanh %290 : vector<8x32xf32>
    %292 = vector.extract_strided_slice %289 {offsets = [0, 0], sizes = [8, 32], strides = [1, 1]} : vector<8x96xf32> to vector<8x32xf32>
    %293 = vector.extract_strided_slice %289 {offsets = [0, 32], sizes = [8, 32], strides = [1, 1]} : vector<8x96xf32> to vector<8x32xf32>
    %294 = vector.extract_strided_slice %289 {offsets = [0, 64], sizes = [8, 32], strides = [1, 1]} : vector<8x96xf32> to vector<8x32xf32>
    %295 = arith.mulf %293, %256 : vector<8x32xf32>
    %296 = arith.mulf %292, %291 : vector<8x32xf32>
    %297 = arith.addf %295, %296 : vector<8x32xf32>
    %298 = math.tanh %297 : vector<8x32xf32>
    %299 = arith.mulf %294, %298 : vector<8x32xf32>
    %c7_i32 = arith.constant 7 : i32
    %300 = arith.index_cast %c7_i32 : i32 to index
    %c0_65 = arith.constant 0 : index
    %c0_66 = arith.constant 0 : index
    %301 = vector.load %arg1[%300, %c0_65, %c0_66] : memref<8x8x128xf32, #tpu.memory_space<vmem>>, vector<1x8x128xf32>
    %302 = vector.shape_cast %301 : vector<1x8x128xf32> to vector<8x128xf32>
    %cst_67 = arith.constant dense<0.000000e+00> : vector<8x128xf32>
    %303 = tpu.matmul %279, %3, %cst_67 {dimension_numbers = #tpu.dot_dimension_numbers<[1], [0], [0], [1], [0, 0, 1, 1], [], []>} : vector<8x32xf32>, vector<32x128xf32>, vector<8x128xf32> -> vector<8x128xf32>
    %304 = arith.addf %302, %303 : vector<8x128xf32>
    %305 = vector.extract_strided_slice %304 {offsets = [0, 0], sizes = [8, 96], strides = [1, 1]} : vector<8x128xf32> to vector<8x96xf32>
    %306 = arith.negf %305 : vector<8x96xf32>
    %307 = math.exp %306 : vector<8x96xf32>
    %cst_68 = arith.constant 1.000000e+00 : f32
    %308 = vector.broadcast %cst_68 : f32 to vector<8x96xf32>
    %309 = arith.addf %308, %307 : vector<8x96xf32>
    %310 = arith.divf %308, %309 : vector<8x96xf32>
    %311 = vector.extract_strided_slice %304 {offsets = [0, 96], sizes = [8, 32], strides = [1, 1]} : vector<8x128xf32> to vector<8x32xf32>
    %312 = math.tanh %311 : vector<8x32xf32>
    %313 = vector.extract_strided_slice %310 {offsets = [0, 0], sizes = [8, 32], strides = [1, 1]} : vector<8x96xf32> to vector<8x32xf32>
    %314 = vector.extract_strided_slice %310 {offsets = [0, 32], sizes = [8, 32], strides = [1, 1]} : vector<8x96xf32> to vector<8x32xf32>
    %315 = vector.extract_strided_slice %310 {offsets = [0, 64], sizes = [8, 32], strides = [1, 1]} : vector<8x96xf32> to vector<8x32xf32>
    %316 = arith.mulf %314, %277 : vector<8x32xf32>
    %317 = arith.mulf %313, %312 : vector<8x32xf32>
    %318 = arith.addf %316, %317 : vector<8x32xf32>
    %319 = math.tanh %318 : vector<8x32xf32>
    %320 = arith.mulf %315, %319 : vector<8x32xf32>
    %cst_69 = arith.constant dense<0.000000e+00> : vector<8x128xf32>
    %321 = tpu.matmul %320, %4, %cst_69 {dimension_numbers = #tpu.dot_dimension_numbers<[1], [0], [0], [1], [0, 0, 1, 1], [], []>} : vector<8x32xf32>, vector<32x128xf32>, vector<8x128xf32> -> vector<8x128xf32>
    %322 = arith.addf %8, %321 : vector<8x128xf32>
    %cst_70 = arith.constant dense<0.000000e+00> : vector<8x128xf32>
    %323 = tpu.matmul %299, %5, %cst_70 {dimension_numbers = #tpu.dot_dimension_numbers<[1], [0], [0], [1], [0, 0, 1, 1], [], []>} : vector<8x32xf32>, vector<32x128xf32>, vector<8x128xf32> -> vector<8x128xf32>
    %324 = arith.addf %322, %323 : vector<8x128xf32>
    %325 = vector.extract_strided_slice %324 {offsets = [0, 0], sizes = [8, 96], strides = [1, 1]} : vector<8x128xf32> to vector<8x96xf32>
    %326 = arith.negf %325 : vector<8x96xf32>
    %327 = math.exp %326 : vector<8x96xf32>
    %cst_71 = arith.constant 1.000000e+00 : f32
    %328 = vector.broadcast %cst_71 : f32 to vector<8x96xf32>
    %329 = arith.addf %328, %327 : vector<8x96xf32>
    %330 = arith.divf %328, %329 : vector<8x96xf32>
    %331 = vector.extract_strided_slice %324 {offsets = [0, 96], sizes = [8, 32], strides = [1, 1]} : vector<8x128xf32> to vector<8x32xf32>
    %332 = math.tanh %331 : vector<8x32xf32>
    %333 = vector.extract_strided_slice %330 {offsets = [0, 0], sizes = [8, 32], strides = [1, 1]} : vector<8x96xf32> to vector<8x32xf32>
    %334 = vector.extract_strided_slice %330 {offsets = [0, 32], sizes = [8, 32], strides = [1, 1]} : vector<8x96xf32> to vector<8x32xf32>
    %335 = vector.extract_strided_slice %330 {offsets = [0, 64], sizes = [8, 32], strides = [1, 1]} : vector<8x96xf32> to vector<8x32xf32>
    %336 = arith.mulf %334, %297 : vector<8x32xf32>
    %337 = arith.mulf %333, %332 : vector<8x32xf32>
    %338 = arith.addf %336, %337 : vector<8x32xf32>
    %339 = math.tanh %338 : vector<8x32xf32>
    %340 = arith.mulf %335, %339 : vector<8x32xf32>
    %c8_i32 = arith.constant 8 : i32
    %c0_72 = arith.constant 0 : index
    %c0_73 = arith.constant 0 : index
    %341 = vector.load %arg9[%c0_72, %c0_73] : memref<8x32xf32, #tpu.memory_space<vmem>>, vector<8x32xf32>
    tpu.vector_store %arg9[%c0_72, %c0_73], %320 {strides = array<i32>} : memref<8x32xf32, #tpu.memory_space<vmem>>, vector<8x32xf32>,
    %c0_74 = arith.constant 0 : index
    %c0_75 = arith.constant 0 : index
    %342 = vector.load %arg10[%c0_74, %c0_75] : memref<8x32xf32, #tpu.memory_space<vmem>>, vector<8x32xf32>
    tpu.vector_store %arg10[%c0_74, %c0_75], %318 {strides = array<i32>} : memref<8x32xf32, #tpu.memory_space<vmem>>, vector<8x32xf32>,
    %c0_76 = arith.constant 0 : index
    %c0_77 = arith.constant 0 : index
    %343 = vector.load %arg11[%c0_76, %c0_77] : memref<8x32xf32, #tpu.memory_space<vmem>>, vector<8x32xf32>
    tpu.vector_store %arg11[%c0_76, %c0_77], %340 {strides = array<i32>} : memref<8x32xf32, #tpu.memory_space<vmem>>, vector<8x32xf32>,
    %c0_78 = arith.constant 0 : index
    %c0_79 = arith.constant 0 : index
    %344 = vector.load %arg12[%c0_78, %c0_79] : memref<8x32xf32, #tpu.memory_space<vmem>>, vector<8x32xf32>
    tpu.vector_store %arg12[%c0_78, %c0_79], %338 {strides = array<i32>} : memref<8x32xf32, #tpu.memory_space<vmem>>, vector<8x32xf32>,
    %c0_i32_80 = arith.constant 0 : i32
    %345 = arith.cmpi eq, %arg0, %c0_i32_80 : i32
    %346 = arith.extui %345 : i1 to i32
    %c0_i32_81 = arith.constant 0 : i32
    %347 = arith.cmpi ne, %346, %c0_i32_81 : i32
    scf.if %347 {
      %c0_82 = arith.constant 0 : index
      %c0_83 = arith.constant 0 : index
      %348 = vector.load %arg6[%c0_82, %c0_83] : memref<32x2xf32, #tpu.memory_space<vmem>>, vector<32x2xf32>
      %cst_84 = arith.constant dense<0.000000e+00> : vector<8x2xf32>
      %349 = tpu.matmul %340, %348, %cst_84 {dimension_numbers = #tpu.dot_dimension_numbers<[1], [0], [0], [1], [0, 0, 1, 1], [], []>} : vector<8x32xf32>, vector<32x2xf32>, vector<8x2xf32> -> vector<8x2xf32>
      %c0_85 = arith.constant 0 : index
      %c0_86 = arith.constant 0 : index
      %350 = vector.load %arg7[%c0_85, %c0_86] : memref<1x2xf32, #tpu.memory_space<vmem>>, vector<1x2xf32>
      %351 = vector.broadcast %350 : vector<1x2xf32> to vector<8x2xf32>
      %352 = arith.addf %349, %351 : vector<8x2xf32>
      %c0_87 = arith.constant 0 : index
      %c0_88 = arith.constant 0 : index
      %353 = vector.load %arg8[%c0_87, %c0_88] : memref<8x2xf32, #tpu.memory_space<vmem>>, vector<8x2xf32>
      tpu.vector_store %arg8[%c0_87, %c0_88], %352 {strides = array<i32>} : memref<8x2xf32, #tpu.memory_space<vmem>>, vector<8x2xf32>,
    } else {
    }
    return
  }
  func.func @transform_0(%arg0: i32) -> (i32, i32, i32) {
    %c0_i32 = arith.constant 0 : i32
    %c0_i32_0 = arith.constant 0 : i32
    %c0_i32_1 = arith.constant 0 : i32
    return %arg0, %c0_i32, %c0_i32_0 : i32, i32, i32
  }
  func.func @transform_1(%arg0: i32) -> (i32, i32) {
    %c0_i32 = arith.constant 0 : i32
    %c0_i32_0 = arith.constant 0 : i32
    %c0_i32_1 = arith.constant 0 : i32
    return %c0_i32, %c0_i32_0 : i32, i32
  }
  func.func @transform_2(%arg0: i32) -> (i32, i32) {
    %c0_i32 = arith.constant 0 : i32
    %c0_i32_0 = arith.constant 0 : i32
    %c0_i32_1 = arith.constant 0 : i32
    return %c0_i32, %c0_i32_0 : i32, i32
  }
  func.func @transform_3(%arg0: i32) -> (i32, i32) {
    %c0_i32 = arith.constant 0 : i32
    %c0_i32_0 = arith.constant 0 : i32
    %c0_i32_1 = arith.constant 0 : i32
    return %c0_i32, %c0_i32_0 : i32, i32
  }
  func.func @transform_4(%arg0: i32) -> (i32, i32) {
    %c0_i32 = arith.constant 0 : i32
    %c0_i32_0 = arith.constant 0 : i32
    %c0_i32_1 = arith.constant 0 : i32
    return %c0_i32, %c0_i32_0 : i32, i32
  }
  func.func @transform_5(%arg0: i32) -> (i32, i32) {
    %c0_i32 = arith.constant 0 : i32
    %c0_i32_0 = arith.constant 0 : i32
    %c0_i32_1 = arith.constant 0 : i32
    return %c0_i32, %c0_i32_0 : i32, i32
  }
  func.func @transform_6(%arg0: i32) -> (i32, i32) {
    %c0_i32 = arith.constant 0 : i32
    %c0_i32_0 = arith.constant 0 : i32
    %c0_i32_1 = arith.constant 0 : i32
    return %c0_i32, %c0_i32_0 : i32, i32
  }
  func.func @transform_7(%arg0: i32) -> (i32, i32) {
    %c0_i32 = arith.constant 0 : i32
    %c0_i32_0 = arith.constant 0 : i32
    %c0_i32_1 = arith.constant 0 : i32
    return %c0_i32, %c0_i32_0 : i32, i32
  }
}

</mosaic_0001>

<bundles_post_ra>
// kernel: sentiment_lstm_forward.1
= control target key start
LH: loop header
LB: loop body
LE: loop exit
PB: predicated region body
PF: predicated region fallthrough
CT: control target
= control target key end

     0   :  { %vm30_vm0 = vcmask 261120   ;;  %v2956_v0 = vmov 0.0   ;;  %vm2957_vm1 = vmmov 0   ;;  %s2958_s11 = smov 32   ;;  %s2959_s28 = smov 64   ;;  %vm2354_vm2 = vcmask 15360   ;;  %s3552_s1 = inlined_call_operand.vmem [shape: f32[32,128], index: 1, kind: input, shape index: {}]   ;;  %s3553_s0 = inlined_call_operand.vmem [shape: f32[8,8,128], index: 0, kind: input, shape index: {}]   ;;  %s3554_s2 = inlined_call_operand.vmem [shape: f32[32,128], index: 2, kind: input, shape index: {}]   ;;  %s3555_s3 = inlined_call_operand.vmem [shape: f32[32,128], index: 3, kind: input, shape index: {}]   ;;  %s3556_s4 = inlined_call_operand.vmem [shape: f32[1,128], index: 4, kind: input, shape index: {}]   ;;  %s3557_s5 = inlined_call_operand.vmem [shape: f32[32,2], index: 5, kind: input, shape index: {}]   ;;  %s3558_s6 = inlined_call_operand.vmem [shape: f32[1,2], index: 6, kind: input, shape index: {}]   ;;  %s3559_s7 = inlined_call_operand.vmem [shape: f32[8,2], index: 7, kind: output, shape index: {}]  }
   0x1   :  { %2535 = vmatprep.subr.mxu0 %v2956_v0  ;;  %v3005_v1 = vld [vmem:[%s3552_s1 + $0x18] sm:$0xff]  ;;  %v3010_v2 = vld [vmem:[%s3552_s1 + $0x10] sm:$0xff]  ;;  %2543 = vmatprep.mubr.msk.f32.mxu0 %vm2957_vm1, %v2956_v0  ;;  %31 = vst.msk [vmem:[#allocation2] sm:$0xff] %vm30_vm0, %v2956_v0  ;;  %32 = vst.msk [vmem:[#allocation3] sm:$0xff] %vm30_vm0, %v2956_v0  ;;  %s2960_s9 = smov 96  }
   0x2   :  { %33 = vst.msk [vmem:[#allocation4] sm:$0xff] %vm30_vm0, %v2956_v0  ;;  %34 = vst.msk [vmem:[#allocation5] sm:$0xff] %vm30_vm0, %v2956_v0  ;;  %2536 = vmatpush3.msra.mxu0 %v3005_v1  ;;  %2546 = vmatprep.subr.mxu1 %v2956_v0  ;;  %v3028_v3 = vld [vmem:[%s3552_s1 + $0x8] sm:$0xff]  ;;  %v3037_v4 = vld [vmem:[%s3552_s1] sm:$0xff] }
   0x3   :  { %2537 = vmatprep.subr.mxu0 %v2956_v0  ;;  %2554 = vmatprep.mubr.msk.f32.mxu1 %vm2957_vm1, %v2956_v0  ;;  %v58_v6 = vld [vmem:[%s3553_s0] sm:$0xff]  ;;  %v3058_v22 = vld [vmem:[%s3554_s2 + $0x18] sm:$0xff]  ;;  %v3063_v23 = vld [vmem:[%s3554_s2 + $0x10] sm:$0xff] }
   0x4   :  { %2538 = vmatpush3.msra.mxu0 %v3010_v2  ;;  %v3068_v24 = vld [vmem:[%s3555_s3 + $0x18] sm:$0xff]  ;;  %2547 = vmatpush3.msra.mxu1 %v3058_v22  ;;  %v3075_v25 = vld [vmem:[%s3555_s3 + $0x10] sm:$0xff]  ;;  %v3081_v26 = vld [vmem:[%s3554_s2 + $0x8] sm:$0xff] }
   0x5   :  { %2539 = vmatprep.subr.mxu0 %v2956_v0  ;;  %2548 = vmatprep.subr.mxu1 %v2956_v0  ;;  %v3087_v27 = vld [vmem:[%s3555_s3 + $0x8] sm:$0xff]  ;;  %v3095_v28 = vld [vmem:[%s3554_s2] sm:$0xff] }
   0x6   :  { %2540 = vmatpush3.msra.mxu0 %v3028_v3  ;;  %2549 = vmatpush3.msra.mxu1 %v3063_v23  ;;  %v3108_v30 = vld [vmem:[%s3555_s3] sm:$0xff]  ;;  %v2366_v42 = vld [vmem:[%s3553_s0 + $0x8] sm:$0xff] }
   0x7   :  { %2541 = vmatprep.subr.mxu0 %v2956_v0  ;;  %2550 = vmatprep.subr.mxu1 %v2956_v0  ;;  %v3149_v37 = vld [vmem:[%s3556_s4] ss:$0 sm:$0xff] }
   0x8   :  { %2542 = vmatpush3.msra.mxu0 %v3037_v4  ;;  %v54_v5 = vld [vmem:[#allocation2] sm:$0xff]  ;;  %v55_v11 = vld [vmem:[#allocation3] sm:$0xff]  ;;  %2551 = vmatpush3.msra.mxu1 %v3081_v26 }
   0x9   :  { %2544 = vmatmul.mubr.msk.f32.vlgmr.msra.gmra.mxu0 %vm30_vm0, %v54_v5  ;;  %2557 = vmatprep.subr.mxu0 %v2956_v0  ;;  %v56_v31 = vld [vmem:[#allocation4] sm:$0xff]  ;;  %v57_v47 = vld [vmem:[#allocation5] sm:$0xff] }
   0xa   :  { %2565 = vmatprep.mubr.msk.f32.mxu0 %vm2957_vm1, %v2956_v0  ;;  %2558 = vmatpush3.msra.mxu0 %v3068_v24 }
   0xb   :  { %2559 = vmatprep.subr.mxu0 %v2956_v0  ;;  %2552 = vmatprep.subr.mxu1 %v2956_v0 }
   0xc   :  { %2560 = vmatpush3.msra.mxu0 %v3075_v25  ;;  %2553 = vmatpush3.msra.mxu1 %v3095_v28 }
   0xd   :  { %2561 = vmatprep.subr.mxu0 %v2956_v0  ;;  %2568 = vmatprep.subr.mxu1 %v2956_v0 }
   0xe   :  { %2562 = vmatpush3.msra.mxu0 %v3087_v27 }
   0xf   :  { %2563 = vmatprep.subr.mxu0 %v2956_v0 }
  0x10   :  { %2564 = vmatpush3.msra.mxu0 %v3108_v30 }
  0x11   :  { %2566 = vmatmul.mubr.msk.f32.vlgmr.msra.gmra.mxu0 %vm30_vm0, %v56_v31  ;;  %2579 = vmatprep.subr.mxu0 %v2956_v0  ;;  %v2372_v31 = vld [vmem:[%s3553_s0 + $0x10] sm:$0xff] }
  0x12   :  { %2580 = vmatpush3.msra.mxu0 %v3058_v22  ;;  %2587 = vmatprep.mubr.msk.f32.mxu0 %vm2957_vm1, %v2956_v0 }
  0x13   :  { %2581 = vmatprep.subr.mxu0 %v2956_v0 }
  0x14   :  { %2582 = vmatpush3.msra.mxu0 %v3063_v23 }
  0x15   :  { %2583 = vmatprep.subr.mxu0 %v2956_v0 }
  0x16   :  { %2584 = vmatpush3.msra.mxu0 %v3081_v26 }
  0x17   :  { %2585 = vmatprep.subr.mxu0 %v2956_v0 }
  0x18   :  { %2586 = vmatpush3.msra.mxu0 %v3095_v28 }
  0x19   :  { %2601 = vmatprep.subr.mxu0 %v2956_v0 }
  0xc9   :  { %v129_v7 = vpop.f32.mrf.mxu0 }
  0xca   :  { %v133_v8 = vadd.f32 %v129_v7, %v58_v6 }
  0xcb   :  { %v2545_v9 = vpop.f32.mrf.mxu0 }
  0xcc   :  { %2815 = vtanh.f32 %v133_v8  ;;  %v2362_v12 = vmul.f32 -1.442695, %v133_v8 }
  0xce   :  { %2817 = vpow2.f32 %v2362_v12 }
  0xd1   :  { %v307_v35 = vpop.f32.mrf.mxu0 }
  0xd3   :  { %v2567_v36 = vpop.f32.mrf.mxu0 }
  0xd9   :  { %v2816_v10 = vpop.eup %2815 }
  0xda   :  { %147 = vrot.lane.b32.xlu0 %v2816_v10, %s2958_s11 }
  0xdb   :  { %v2818_v13 = vpop.eup %2817 }
  0xdc   :  { %v137_v14 = vadd.f32 1.0, %v2818_v13 }
  0xde   :  { %142 = vrot.lane.b32.xlu0 %v55_v11, %s2958_s11  ;;  %2819 = vrcp.f32 %v137_v14 }
  0xeb   :  { %v2820_v15 = vpop.eup %2819 }
 0x14c   :  { %v148_v16 = vpop.permute.xlu0 %147 }
 0x14d   :  { %v150_v17 = vmul.f32 %v2820_v15, %v148_v16 }
 0x14f   :  { %152 = vrot.lane.b32.xlu1 %v150_v17, %s2958_s11 }
 0x150   :  { %v143_v18 = vpop.permute.xlu0 %142 }
 0x151   :  { %v145_v19 = vmul.f32 %v2820_v15, %v143_v18 }
 0x1c1   :  { %v153_v20 = vpop.permute.xlu1 %152 }
 0x1c2   :  { %v3052_v21 = vadd.f32 %v153_v20, %v145_v19 }
 0x1c4   :  { %2821 = vtanh.f32 %v3052_v21 }
 0x1d1   :  { %v2822_v29 = vpop.eup %2821 }
 0x1d2   :  { %158 = vrot.lane.b32.xlu1 %v2822_v29, %s2958_s11 }
 0x244   :  { %v159_v32 = vpop.permute.xlu1 %158 }
 0x245   :  { %v161_v33 = vmul.f32 %v2820_v15, %v159_v32 }
 0x247   :  { %163 = vrot.lane.b32.xlu0 %v161_v33, %s2959_s28 }
 0x2b9   :  { %v164_v34 = vpop.permute.xlu0 %163 }
 0x2ba   :  { %2555 = vmatmul.mubr.msk.f32.vlgmr.msra.gmra.mxu1 %vm30_vm0, %v164_v34 }
 0x2bb   :  { %2569 = vmatpush3.msra.mxu1 %v3005_v1  ;;  %2576 = vmatprep.mubr.msk.f32.mxu1 %vm2957_vm1, %v2956_v0 }
 0x2bc   :  { %2570 = vmatprep.subr.mxu1 %v2956_v0 }
 0x2bd   :  { %2571 = vmatpush3.msra.mxu1 %v3010_v2 }
 0x2be   :  { %2572 = vmatprep.subr.mxu1 %v2956_v0 }
 0x2bf   :  { %2573 = vmatpush3.msra.mxu1 %v3028_v3 }
 0x2c0   :  { %2574 = vmatprep.subr.mxu1 %v2956_v0 }
 0x2c1   :  { %2575 = vmatpush3.msra.mxu1 %v3037_v4 }
 0x2c2   :  { %2577 = vmatmul.mubr.msk.f32.vlgmr.msra.gmra.mxu1 %vm30_vm0, %v164_v34  ;;  %2590 = vmatprep.subr.mxu1 %v2956_v0 }
 0x2c3   :  { %2591 = vmatpush3.msra.mxu1 %v3068_v24  ;;  %2598 = vmatprep.mubr.msk.f32.mxu1 %vm2957_vm1, %v2956_v0 }
 0x2c4   :  { %2592 = vmatprep.subr.mxu1 %v2956_v0 }
 0x2c5   :  { %2593 = vmatpush3.msra.mxu1 %v3075_v25 }
 0x2c6   :  { %2594 = vmatprep.subr.mxu1 %v2956_v0 }
 0x2c7   :  { %2595 = vmatpush3.msra.mxu1 %v3087_v27 }
 0x2c8   :  { %2596 = vmatprep.subr.mxu1 %v2956_v0 }
 0x2c9   :  { %2597 = vmatpush3.msra.mxu1 %v3108_v30 }
 0x2ca   :  { %2612 = vmatprep.subr.mxu1 %v2956_v0 }
 0x37a   :  { %v233_v38 = vpop.f32.mrf.mxu1 }
 0x37b   :  { %v237_v39 = vadd.f32 %v3149_v37, %v233_v38 }
 0x37c   :  { %v2556_v40 = vpop.f32.mrf.mxu1 }
 0x37d   :  { %v311_v41 = vadd.f32 %v307_v35, %v237_v39 }
 0x37f   :  { %2823 = vtanh.f32 %v311_v41  ;;  %v2365_v50 = vmul.f32 -1.442695, %v311_v41 }
 0x382   :  { %v408_v43 = vpop.f32.mrf.mxu1 }
 0x383   :  { %v412_v44 = vadd.f32 %v2366_v42, %v408_v43 }
 0x384   :  { %v2578_v45 = vpop.f32.mrf.mxu1 }
 0x385   :  { %2825 = vtanh.f32 %v412_v44  ;;  %v2368_v49 = vmul.f32 -1.442695, %v412_v44 }
 0x387   :  { %2827 = vpow2.f32 %v2368_v49 }
 0x388   :  { %2829 = vpow2.f32 %v2365_v50 }
 0x38c   :  { %v2824_v46 = vpop.eup %2823 }
 0x38d   :  { %325 = vrot.lane.b32.xlu0 %v2824_v46, %s2958_s11 }
 0x391   :  { %320 = vrot.lane.b32.xlu0 %v57_v47, %s2958_s11 }
 0x392   :  { %v2826_v48 = vpop.eup %2825 }
 0x393   :  { %422 = vrot.lane.b32.xlu1 %v2826_v48, %s2958_s11 }
 0x394   :  { %v2828_v51 = vpop.eup %2827 }
 0x395   :  { %v416_v52 = vadd.f32 1.0, %v2828_v51  ;;  %v2830_v53 = vpop.eup %2829 }
 0x396   :  { %v315_v54 = vadd.f32 1.0, %v2830_v53 }
 0x397   :  { %2831 = vrcp.f32 %v416_v52 }
 0x398   :  { %2833 = vrcp.f32 %v315_v54 }
 0x3a4   :  { %v2832_v55 = vpop.eup %2831 }
 0x3a5   :  { %v2834_v59 = vpop.eup %2833  ;;  %v420_v61 = vmul.f32 %v2832_v55, %v3052_v21 }
 0x3ff   :  { %v326_v58 = vpop.permute.xlu0 %325 }
 0x400   :  { %v328_v60 = vmul.f32 %v2834_v59, %v326_v58 }
 0x403   :  { %v321_v62 = vpop.permute.xlu0 %320 }
 0x404   :  { %v323_v6 = vmul.f32 %v2834_v59, %v321_v62 }
 0x405   :  { %v423_v56 = vpop.permute.xlu1 %422 }
 0x406   :  { %v425_v57 = vmul.f32 %v2832_v55, %v423_v56 }
 0x408   :  { %427 = vrot.lane.b32.xlu1 %v425_v57, %s2958_s11 }
 0x40c   :  { %330 = vrot.lane.b32.xlu1 %v328_v60, %s2958_s11 }
 0x47a   :  { %v428_v63 = vpop.permute.xlu1 %427 }
 0x47b   :  { %v3161_v5 = vadd.f32 %v428_v63, %v420_v61 }
 0x47d   :  { %2835 = vtanh.f32 %v3161_v5 }
 0x47e   :  { %v331_v7 = vpop.permute.xlu1 %330 }
 0x47f   :  { %v3164_v8 = vadd.f32 %v331_v7, %v323_v6 }
 0x481   :  { %2837 = vtanh.f32 %v3164_v8 }
 0x48a   :  { %v2836_v9 = vpop.eup %2835 }
 0x48b   :  { %433 = vrot.lane.b32.xlu0 %v2836_v9, %s2958_s11 }
 0x48e   :  { %v2838_v10 = vpop.eup %2837 }
 0x48f   :  { %336 = vrot.lane.b32.xlu1 %v2838_v10, %s2958_s11 }
 0x4fd   :  { %v434_v11 = vpop.permute.xlu0 %433 }
 0x4fe   :  { %v436_v12 = vmul.f32 %v2832_v55, %v434_v11  ;;  %v2378_v11 = vld [vmem:[%s3553_s0 + $0x18] sm:$0xff] }
 0x500   :  { %438 = vrot.lane.b32.xlu0 %v436_v12, %s2959_s28 }
 0x501   :  { %v337_v13 = vpop.permute.xlu1 %336 }
 0x502   :  { %v339_v14 = vmul.f32 %v2834_v59, %v337_v13 }
 0x504   :  { %514 = vrot.lane.b32.xlu1 %v339_v14, %s2959_s28 }
 0x572   :  { %v439_v15 = vpop.permute.xlu0 %438 }
 0x573   :  { %2588 = vmatmul.mubr.msk.f32.vlgmr.msra.gmra.mxu0 %vm30_vm0, %v439_v15 }
 0x574   :  { %2602 = vmatpush3.msra.mxu0 %v3005_v1  ;;  %2609 = vmatprep.mubr.msk.f32.mxu0 %vm2957_vm1, %v2956_v0 }
 0x575   :  { %2603 = vmatprep.subr.mxu0 %v2956_v0 }
 0x576   :  { %2604 = vmatpush3.msra.mxu0 %v3010_v2  ;;  %v515_v16 = vpop.permute.xlu1 %514 }
 0x577   :  { %2605 = vmatprep.subr.mxu0 %v2956_v0  ;;  %2599 = vmatmul.mubr.msk.f32.vlgmr.msra.gmra.mxu1 %vm30_vm0, %v515_v16 }
 0x578   :  { %2606 = vmatpush3.msra.mxu0 %v3028_v3  ;;  %2613 = vmatpush3.msra.mxu1 %v3058_v22 }
 0x579   :  { %2607 = vmatprep.subr.mxu0 %v2956_v0  ;;  %2614 = vmatprep.subr.mxu1 %v2956_v0 }
 0x57a   :  { %2608 = vmatpush3.msra.mxu0 %v3037_v4  ;;  %2615 = vmatpush3.msra.mxu1 %v3063_v23 }
 0x57b   :  { %2610 = vmatmul.mubr.msk.f32.vlgmr.msra.gmra.mxu0 %vm30_vm0, %v439_v15  ;;  %2623 = vmatprep.subr.mxu0 %v2956_v0 }
 0x57c   :  { %2624 = vmatpush3.msra.mxu0 %v3068_v24  ;;  %2616 = vmatprep.subr.mxu1 %v2956_v0 }
 0x57d   :  { %2625 = vmatprep.subr.mxu0 %v2956_v0  ;;  %2617 = vmatpush3.msra.mxu1 %v3081_v26 }
 0x57e   :  { %2626 = vmatpush3.msra.mxu0 %v3075_v25  ;;  %2631 = vmatprep.mubr.msk.f32.mxu0 %vm2957_vm1, %v2956_v0 }
 0x57f   :  { %2627 = vmatprep.subr.mxu0 %v2956_v0  ;;  %2618 = vmatprep.subr.mxu1 %v2956_v0 }
 0x580   :  { %2628 = vmatpush3.msra.mxu0 %v3087_v27  ;;  %2619 = vmatpush3.msra.mxu1 %v3095_v28 }
 0x581   :  { %2629 = vmatprep.subr.mxu0 %v2956_v0  ;;  %2620 = vmatprep.mubr.msk.f32.mxu1 %vm2957_vm1, %v2956_v0 }
 0x582   :  { %2630 = vmatpush3.msra.mxu0 %v3108_v30  ;;  %2634 = vmatprep.subr.mxu1 %v2956_v0 }
 0x583   :  { %2645 = vmatprep.subr.mxu0 %v2956_v0 }
 0x633   :  { %v508_v17 = vpop.f32.mrf.mxu0 }
 0x634   :  { %v512_v19 = vadd.f32 %v3149_v37, %v508_v17 }
 0x635   :  { %v2589_v18 = vpop.f32.mrf.mxu0 }
 0x637   :  { %v584_v20 = vpop.f32.mrf.mxu1 }
 0x638   :  { %v588_v21 = vadd.f32 %v584_v20, %v512_v19 }
 0x639   :  { %v2600_v29 = vpop.f32.mrf.mxu1 }
 0x63a   :  { %2839 = vtanh.f32 %v588_v21  ;;  %v2371_v38 = vmul.f32 -1.442695, %v588_v21 }
 0x63b   :  { %v681_v32 = vpop.f32.mrf.mxu0 }
 0x63c   :  { %v685_v33 = vadd.f32 %v2372_v31, %v681_v32 }
 0x63d   :  { %v2611_v34 = vpop.f32.mrf.mxu0 }
 0x63e   :  { %2841 = vtanh.f32 %v685_v33  ;;  %v2374_v39 = vmul.f32 -1.442695, %v685_v33 }
 0x63f   :  { %2843 = vpow2.f32 %v2371_v38 }
 0x640   :  { %2845 = vpow2.f32 %v2374_v39 }
 0x647   :  { %v2840_v35 = vpop.eup %2839 }
 0x648   :  { %598 = vrot.lane.b32.xlu1 %v2840_v35, %s2958_s11 }
 0x64b   :  { %v2842_v36 = vpop.eup %2841 }
 0x64c   :  { %695 = vrot.lane.b32.xlu0 %v2842_v36, %s2958_s11  ;;  %v2844_v40 = vpop.eup %2843 }
 0x64d   :  { %v592_v41 = vadd.f32 1.0, %v2844_v40  ;;  %v2846_v42 = vpop.eup %2845 }
 0x64e   :  { %v689_v43 = vadd.f32 1.0, %v2846_v42 }
 0x64f   :  { %2847 = vrcp.f32 %v592_v41 }
 0x650   :  { %2849 = vrcp.f32 %v689_v43 }
 0x65c   :  { %v2848_v44 = vpop.eup %2847 }
 0x65d   :  { %v2850_v47 = vpop.eup %2849  ;;  %v596_v50 = vmul.f32 %v2848_v44, %v3164_v8 }
 0x65e   :  { %v693_v53 = vmul.f32 %v2850_v47, %v3161_v5 }
 0x6ba   :  { %v599_v45 = vpop.permute.xlu1 %598 }
 0x6bb   :  { %v601_v46 = vmul.f32 %v2848_v44, %v599_v45 }
 0x6bd   :  { %603 = vrot.lane.b32.xlu1 %v601_v46, %s2958_s11 }
 0x6be   :  { %v696_v48 = vpop.permute.xlu0 %695 }
 0x6bf   :  { %v698_v49 = vmul.f32 %v2850_v47, %v696_v48 }
 0x6c1   :  { %700 = vrot.lane.b32.xlu0 %v698_v49, %s2958_s11 }
 0x72f   :  { %v604_v51 = vpop.permute.xlu1 %603 }
 0x730   :  { %v3213_v52 = vadd.f32 %v604_v51, %v596_v50 }
 0x732   :  { %2851 = vtanh.f32 %v3213_v52 }
 0x733   :  { %v701_v54 = vpop.permute.xlu0 %700 }
 0x734   :  { %v3217_v55 = vadd.f32 %v701_v54, %v693_v53 }
 0x736   :  { %2853 = vtanh.f32 %v3217_v55 }
 0x73f   :  { %v2852_v56 = vpop.eup %2851 }
 0x740   :  { %609 = vrot.lane.b32.xlu1 %v2852_v56, %s2958_s11 }
 0x743   :  { %v2854_v57 = vpop.eup %2853 }
 0x744   :  { %706 = vrot.lane.b32.xlu0 %v2854_v57, %s2958_s11 }
 0x7b2   :  { %v610_v58 = vpop.permute.xlu1 %609 }
 0x7b3   :  { %v612_v59 = vmul.f32 %v2848_v44, %v610_v58  ;;  %v2384_v58 = vld [vmem:[%s3553_s0 + $0x20] sm:$0xff] }
 0x7b5   :  { %787 = vrot.lane.b32.xlu1 %v612_v59, %s2959_s28 }
 0x7b6   :  { %v707_v60 = vpop.permute.xlu0 %706 }
 0x7b7   :  { %v709_v61 = vmul.f32 %v2850_v47, %v707_v60 }
 0x7b9   :  { %711 = vrot.lane.b32.xlu0 %v709_v61, %s2959_s28 }
 0x827   :  { %v788_v62 = vpop.permute.xlu1 %787 }
 0x828   :  { %2632 = vmatmul.mubr.msk.f32.vlgmr.msra.gmra.mxu0 %vm30_vm0, %v788_v62 }
 0x829   :  { %2646 = vmatpush3.msra.mxu0 %v3058_v22  ;;  %2653 = vmatprep.mubr.msk.f32.mxu0 %vm2957_vm1, %v2956_v0 }
 0x82a   :  { %2647 = vmatprep.subr.mxu0 %v2956_v0 }
 0x82b   :  { %v712_v63 = vpop.permute.xlu0 %711  ;;  %2648 = vmatpush3.msra.mxu0 %v3063_v23 }
 0x82c   :  { %2621 = vmatmul.mubr.msk.f32.vlgmr.msra.gmra.mxu1 %vm30_vm0, %v712_v63  ;;  %2649 = vmatprep.subr.mxu0 %v2956_v0 }
 0x82d   :  { %2635 = vmatpush3.msra.mxu1 %v3005_v1  ;;  %2642 = vmatprep.mubr.msk.f32.mxu1 %vm2957_vm1, %v2956_v0 }
 0x82e   :  { %2636 = vmatprep.subr.mxu1 %v2956_v0  ;;  %2650 = vmatpush3.msra.mxu0 %v3081_v26 }
 0x82f   :  { %2637 = vmatpush3.msra.mxu1 %v3010_v2  ;;  %2651 = vmatprep.subr.mxu0 %v2956_v0 }
 0x830   :  { %2638 = vmatprep.subr.mxu1 %v2956_v0  ;;  %2652 = vmatpush3.msra.mxu0 %v3095_v28 }
 0x831   :  { %2639 = vmatpush3.msra.mxu1 %v3028_v3  ;;  %2667 = vmatprep.subr.mxu0 %v2956_v0 }
 0x832   :  { %2640 = vmatprep.subr.mxu1 %v2956_v0 }
 0x833   :  { %2641 = vmatpush3.msra.mxu1 %v3037_v4 }
 0x834   :  { %2643 = vmatmul.mubr.msk.f32.vlgmr.msra.gmra.mxu1 %vm30_vm0, %v712_v63  ;;  %2656 = vmatprep.subr.mxu1 %v2956_v0 }
 0x835   :  { %2657 = vmatpush3.msra.mxu1 %v3068_v24  ;;  %2664 = vmatprep.mubr.msk.f32.mxu1 %vm2957_vm1, %v2956_v0 }
 0x836   :  { %2658 = vmatprep.subr.mxu1 %v2956_v0 }
 0x837   :  { %2659 = vmatpush3.msra.mxu1 %v3075_v25 }
 0x838   :  { %2660 = vmatprep.subr.mxu1 %v2956_v0 }
 0x839   :  { %2661 = vmatpush3.msra.mxu1 %v3087_v27 }
 0x83a   :  { %2662 = vmatprep.subr.mxu1 %v2956_v0 }
 0x83b   :  { %2663 = vmatpush3.msra.mxu1 %v3108_v30 }
 0x83c   :  { %2678 = vmatprep.subr.mxu1 %v2956_v0 }
 0x8e8   :  { %v857_v5 = vpop.f32.mrf.mxu0 }
 0x8ea   :  { %v2633_v6 = vpop.f32.mrf.mxu0 }
 0x8ec   :  { %v781_v7 = vpop.f32.mrf.mxu1 }
 0x8ed   :  { %v785_v8 = vadd.f32 %v3149_v37, %v781_v7 }
 0x8ee   :  { %v2622_v9 = vpop.f32.mrf.mxu1 }
 0x8ef   :  { %v861_v10 = vadd.f32 %v857_v5, %v785_v8 }
 0x8f1   :  { %2855 = vtanh.f32 %v861_v10  ;;  %v2377_v17 = vmul.f32 -1.442695, %v861_v10 }
 0x8f4   :  { %v954_v12 = vpop.f32.mrf.mxu1 }
 0x8f5   :  { %v958_v13 = vadd.f32 %v2378_v11, %v954_v12 }
 0x8f6   :  { %v2644_v14 = vpop.f32.mrf.mxu1 }
 0x8f7   :  { %2857 = vtanh.f32 %v958_v13  ;;  %v2380_v18 = vmul.f32 -1.442695, %v958_v13 }
 0x8f8   :  { %2859 = vpow2.f32 %v2377_v17 }
 0x8f9   :  { %2861 = vpow2.f32 %v2380_v18 }
 0x8fe   :  { %v2856_v15 = vpop.eup %2855 }
 0x8ff   :  { %871 = vrot.lane.b32.xlu1 %v2856_v15, %s2958_s11 }
 0x904   :  { %v2858_v16 = vpop.eup %2857 }
 0x905   :  { %968 = vrot.lane.b32.xlu0 %v2858_v16, %s2958_s11  ;;  %v2860_v19 = vpop.eup %2859 }
 0x906   :  { %v865_v20 = vadd.f32 1.0, %v2860_v19  ;;  %v2862_v21 = vpop.eup %2861 }
 0x907   :  { %v962_v29 = vadd.f32 1.0, %v2862_v21 }
 0x908   :  { %2863 = vrcp.f32 %v865_v20 }
 0x909   :  { %2865 = vrcp.f32 %v962_v29 }
 0x915   :  { %v2864_v31 = vpop.eup %2863 }
 0x916   :  { %v2866_v34 = vpop.eup %2865  ;;  %v869_v38 = vmul.f32 %v2864_v31, %v3213_v52 }
 0x917   :  { %v966_v41 = vmul.f32 %v2866_v34, %v3217_v55 }
 0x971   :  { %v872_v32 = vpop.permute.xlu1 %871 }
 0x972   :  { %v874_v33 = vmul.f32 %v2864_v31, %v872_v32 }
 0x974   :  { %876 = vrot.lane.b32.xlu1 %v874_v33, %s2958_s11 }
 0x977   :  { %v969_v35 = vpop.permute.xlu0 %968 }
 0x978   :  { %v971_v36 = vmul.f32 %v2866_v34, %v969_v35 }
 0x97a   :  { %973 = vrot.lane.b32.xlu0 %v971_v36, %s2958_s11 }
 0x9e6   :  { %v877_v39 = vpop.permute.xlu1 %876 }
 0x9e7   :  { %v3266_v40 = vadd.f32 %v877_v39, %v869_v38 }
 0x9e9   :  { %2867 = vtanh.f32 %v3266_v40 }
 0x9ec   :  { %v974_v42 = vpop.permute.xlu0 %973 }
 0x9ed   :  { %v3270_v43 = vadd.f32 %v974_v42, %v966_v41 }
 0x9ef   :  { %2869 = vtanh.f32 %v3270_v43 }
 0x9f6   :  { %v2868_v44 = vpop.eup %2867 }
 0x9f7   :  { %882 = vrot.lane.b32.xlu1 %v2868_v44, %s2958_s11 }
 0x9fc   :  { %v2870_v45 = vpop.eup %2869 }
 0x9fd   :  { %979 = vrot.lane.b32.xlu0 %v2870_v45, %s2958_s11 }
 0xa69   :  { %v883_v46 = vpop.permute.xlu1 %882 }
 0xa6a   :  { %v885_v47 = vmul.f32 %v2864_v31, %v883_v46 }
 0xa6c   :  { %1060 = vrot.lane.b32.xlu1 %v885_v47, %s2959_s28 }
 0xa6f   :  { %v980_v48 = vpop.permute.xlu0 %979 }
 0xa70   :  { %v982_v49 = vmul.f32 %v2866_v34, %v980_v48 }
 0xa72   :  { %984 = vrot.lane.b32.xlu0 %v982_v49, %s2959_s28 }
 0xade   :  { %v1061_v50 = vpop.permute.xlu1 %1060 }
 0xadf   :  { %2665 = vmatmul.mubr.msk.f32.vlgmr.msra.gmra.mxu1 %vm30_vm0, %v1061_v50 }
 0xae0   :  { %2679 = vmatpush3.msra.mxu1 %v3058_v22  ;;  %2686 = vmatprep.mubr.msk.f32.mxu1 %vm2957_vm1, %v2956_v0 }
 0xae1   :  { %2680 = vmatprep.subr.mxu1 %v2956_v0 }
 0xae2   :  { %2681 = vmatpush3.msra.mxu1 %v3063_v23 }
 0xae3   :  { %2682 = vmatprep.subr.mxu1 %v2956_v0 }
 0xae4   :  { %v985_v51 = vpop.permute.xlu0 %984  ;;  %2683 = vmatpush3.msra.mxu1 %v3081_v26 }
 0xae5   :  { %2654 = vmatmul.mubr.msk.f32.vlgmr.msra.gmra.mxu0 %vm30_vm0, %v985_v51  ;;  %2684 = vmatprep.subr.mxu1 %v2956_v0 }
 0xae6   :  { %2668 = vmatpush3.msra.mxu0 %v3005_v1  ;;  %2675 = vmatprep.mubr.msk.f32.mxu0 %vm2957_vm1, %v2956_v0 }
 0xae7   :  { %2669 = vmatprep.subr.mxu0 %v2956_v0  ;;  %2685 = vmatpush3.msra.mxu1 %v3095_v28 }
 0xae8   :  { %2670 = vmatpush3.msra.mxu0 %v3010_v2  ;;  %2700 = vmatprep.subr.mxu1 %v2956_v0 }
 0xae9   :  { %2671 = vmatprep.subr.mxu0 %v2956_v0 }
 0xaea   :  { %2672 = vmatpush3.msra.mxu0 %v3028_v3 }
 0xaeb   :  { %2673 = vmatprep.subr.mxu0 %v2956_v0 }
 0xaec   :  { %2674 = vmatpush3.msra.mxu0 %v3037_v4 }
 0xaed   :  { %2676 = vmatmul.mubr.msk.f32.vlgmr.msra.gmra.mxu0 %vm30_vm0, %v985_v51  ;;  %2689 = vmatprep.subr.mxu0 %v2956_v0 }
 0xaee   :  { %2690 = vmatpush3.msra.mxu0 %v3068_v24  ;;  %2697 = vmatprep.mubr.msk.f32.mxu0 %vm2957_vm1, %v2956_v0 }
 0xaef   :  { %2691 = vmatprep.subr.mxu0 %v2956_v0 }
 0xaf0   :  { %2692 = vmatpush3.msra.mxu0 %v3075_v25 }
 0xaf1   :  { %2693 = vmatprep.subr.mxu0 %v2956_v0 }
 0xaf2   :  { %2694 = vmatpush3.msra.mxu0 %v3087_v27 }
 0xaf3   :  { %2695 = vmatprep.subr.mxu0 %v2956_v0 }
 0xaf4   :  { %2696 = vmatpush3.msra.mxu0 %v3108_v30 }
 0xaf5   :  { %2711 = vmatprep.subr.mxu0 %v2956_v0 }
 0xb9f   :  { %v1130_v52 = vpop.f32.mrf.mxu1 }
 0xba1   :  { %v2666_v53 = vpop.f32.mrf.mxu1 }
 0xba5   :  { %v1054_v54 = vpop.f32.mrf.mxu0 }
 0xba6   :  { %v1058_v55 = vadd.f32 %v3149_v37, %v1054_v54 }
 0xba7   :  { %v2655_v56 = vpop.f32.mrf.mxu0 }
 0xba8   :  { %v1134_v57 = vadd.f32 %v1130_v52, %v1058_v55 }
 0xbaa   :  { %2871 = vtanh.f32 %v1134_v57  ;;  %v2383_v5 = vmul.f32 -1.442695, %v1134_v57 }
 0xbad   :  { %v1227_v59 = vpop.f32.mrf.mxu0 }
 0xbae   :  { %v1231_v60 = vadd.f32 %v2384_v58, %v1227_v59 }
 0xbaf   :  { %v2677_v61 = vpop.f32.mrf.mxu0 }
 0xbb0   :  { %2873 = vtanh.f32 %v1231_v60  ;;  %v2386_v6 = vmul.f32 -1.442695, %v1231_v60 }
 0xbb1   :  { %2875 = vpow2.f32 %v2383_v5 }
 0xbb2   :  { %2877 = vpow2.f32 %v2386_v6 }
 0xbb7   :  { %v2872_v62 = vpop.eup %2871 }
 0xbb8   :  { %1144 = vrot.lane.b32.xlu1 %v2872_v62, %s2958_s11 }
 0xbbd   :  { %v2874_v63 = vpop.eup %2873 }
 0xbbe   :  { %1241 = vrot.lane.b32.xlu0 %v2874_v63, %s2958_s11  ;;  %v2876_v7 = vpop.eup %2875 }
 0xbbf   :  { %v1138_v8 = vadd.f32 1.0, %v2876_v7  ;;  %v2878_v9 = vpop.eup %2877 }
 0xbc0   :  { %v1235_v10 = vadd.f32 1.0, %v2878_v9 }
 0xbc1   :  { %2879 = vrcp.f32 %v1138_v8 }
 0xbc2   :  { %2881 = vrcp.f32 %v1235_v10 }
 0xbce   :  { %v2880_v11 = vpop.eup %2879 }
 0xbcf   :  { %v2882_v14 = vpop.eup %2881  ;;  %v1142_v17 = vmul.f32 %v2880_v11, %v3266_v40 }
 0xbd0   :  { %v1239_v20 = vmul.f32 %v2882_v14, %v3270_v43  ;;  %v2390_v43 = vld [vmem:[%s3553_s0 + $0x28] sm:$0xff] }
 0xc2a   :  { %v1145_v12 = vpop.permute.xlu1 %1144 }
 0xc2b   :  { %v1147_v13 = vmul.f32 %v2880_v11, %v1145_v12 }
 0xc2d   :  { %1149 = vrot.lane.b32.xlu1 %v1147_v13, %s2958_s11 }
 0xc30   :  { %v1242_v15 = vpop.permute.xlu0 %1241 }
 0xc31   :  { %v1244_v16 = vmul.f32 %v2882_v14, %v1242_v15 }
 0xc33   :  { %1246 = vrot.lane.b32.xlu0 %v1244_v16, %s2958_s11 }
 0xc9f   :  { %v1150_v18 = vpop.permute.xlu1 %1149 }
 0xca0   :  { %v3319_v19 = vadd.f32 %v1150_v18, %v1142_v17 }
 0xca2   :  { %2883 = vtanh.f32 %v3319_v19 }
 0xca5   :  { %v1247_v21 = vpop.permute.xlu0 %1246 }
 0xca6   :  { %v3323_v29 = vadd.f32 %v1247_v21, %v1239_v20 }
 0xca8   :  { %2885 = vtanh.f32 %v3323_v29 }
 0xcaf   :  { %v2884_v31 = vpop.eup %2883 }
 0xcb0   :  { %1155 = vrot.lane.b32.xlu1 %v2884_v31, %s2958_s11 }
 0xcb5   :  { %v2886_v32 = vpop.eup %2885 }
 0xcb6   :  { %1252 = vrot.lane.b32.xlu0 %v2886_v32, %s2958_s11 }
 0xd22   :  { %v1156_v33 = vpop.permute.xlu1 %1155 }
 0xd23   :  { %v1158_v34 = vmul.f32 %v2880_v11, %v1156_v33 }
 0xd25   :  { %1333 = vrot.lane.b32.xlu1 %v1158_v34, %s2959_s28 }
 0xd28   :  { %v1253_v35 = vpop.permute.xlu0 %1252 }
 0xd29   :  { %v1255_v36 = vmul.f32 %v2882_v14, %v1253_v35 }
 0xd2b   :  { %1257 = vrot.lane.b32.xlu0 %v1255_v36, %s2959_s28 }
 0xd97   :  { %v1334_v38 = vpop.permute.xlu1 %1333 }
 0xd98   :  { %2698 = vmatmul.mubr.msk.f32.vlgmr.msra.gmra.mxu0 %vm30_vm0, %v1334_v38 }
 0xd99   :  { %2712 = vmatpush3.msra.mxu0 %v3058_v22  ;;  %2719 = vmatprep.mubr.msk.f32.mxu0 %vm2957_vm1, %v2956_v0 }
 0xd9a   :  { %2713 = vmatprep.subr.mxu0 %v2956_v0 }
 0xd9b   :  { %2714 = vmatpush3.msra.mxu0 %v3063_v23 }
 0xd9c   :  { %2715 = vmatprep.subr.mxu0 %v2956_v0 }
 0xd9d   :  { %v1258_v39 = vpop.permute.xlu0 %1257  ;;  %2716 = vmatpush3.msra.mxu0 %v3081_v26 }
 0xd9e   :  { %2687 = vmatmul.mubr.msk.f32.vlgmr.msra.gmra.mxu1 %vm30_vm0, %v1258_v39  ;;  %2717 = vmatprep.subr.mxu0 %v2956_v0 }
 0xd9f   :  { %2701 = vmatpush3.msra.mxu1 %v3005_v1  ;;  %2708 = vmatprep.mubr.msk.f32.mxu1 %vm2957_vm1, %v2956_v0 }
 0xda0   :  { %2702 = vmatprep.subr.mxu1 %v2956_v0  ;;  %2718 = vmatpush3.msra.mxu0 %v3095_v28 }
 0xda1   :  { %2703 = vmatpush3.msra.mxu1 %v3010_v2  ;;  %2733 = vmatprep.subr.mxu0 %v2956_v0 }
 0xda2   :  { %2704 = vmatprep.subr.mxu1 %v2956_v0 }
 0xda3   :  { %2705 = vmatpush3.msra.mxu1 %v3028_v3 }
 0xda4   :  { %2706 = vmatprep.subr.mxu1 %v2956_v0 }
 0xda5   :  { %2707 = vmatpush3.msra.mxu1 %v3037_v4 }
 0xda6   :  { %2709 = vmatmul.mubr.msk.f32.vlgmr.msra.gmra.mxu1 %vm30_vm0, %v1258_v39  ;;  %2722 = vmatprep.subr.mxu1 %v2956_v0 }
 0xda7   :  { %2723 = vmatpush3.msra.mxu1 %v3068_v24  ;;  %2730 = vmatprep.mubr.msk.f32.mxu1 %vm2957_vm1, %v2956_v0 }
 0xda8   :  { %2724 = vmatprep.subr.mxu1 %v2956_v0 }
 0xda9   :  { %2725 = vmatpush3.msra.mxu1 %v3075_v25 }
 0xdaa   :  { %2726 = vmatprep.subr.mxu1 %v2956_v0 }
 0xdab   :  { %2727 = vmatpush3.msra.mxu1 %v3087_v27 }
 0xdac   :  { %2728 = vmatprep.subr.mxu1 %v2956_v0 }
 0xdad   :  { %2729 = vmatpush3.msra.mxu1 %v3108_v30 }
 0xdae   :  { %2744 = vmatprep.subr.mxu1 %v2956_v0 }
 0xe58   :  { %v1403_v1 = vpop.f32.mrf.mxu0 }
 0xe5a   :  { %v2699_v2 = vpop.f32.mrf.mxu0 }
 0xe5e   :  { %v1327_v3 = vpop.f32.mrf.mxu1 }
 0xe5f   :  { %v1331_v40 = vadd.f32 %v3149_v37, %v1327_v3 }
 0xe60   :  { %v2688_v41 = vpop.f32.mrf.mxu1 }
 0xe61   :  { %v1407_v42 = vadd.f32 %v1403_v1, %v1331_v40 }
 0xe63   :  { %2887 = vtanh.f32 %v1407_v42  ;;  %v2389_v49 = vmul.f32 -1.442695, %v1407_v42 }
 0xe66   :  { %v1500_v44 = vpop.f32.mrf.mxu1 }
 0xe67   :  { %v1504_v45 = vadd.f32 %v2390_v43, %v1500_v44 }
 0xe68   :  { %v2710_v46 = vpop.f32.mrf.mxu1 }
 0xe69   :  { %2889 = vtanh.f32 %v1504_v45  ;;  %v2392_v50 = vmul.f32 -1.442695, %v1504_v45 }
 0xe6a   :  { %2891 = vpow2.f32 %v2389_v49 }
 0xe6b   :  { %2893 = vpow2.f32 %v2392_v50 }
 0xe70   :  { %v2888_v47 = vpop.eup %2887 }
 0xe71   :  { %1417 = vrot.lane.b32.xlu1 %v2888_v47, %s2958_s11 }
 0xe76   :  { %v2890_v48 = vpop.eup %2889 }
 0xe77   :  { %1514 = vrot.lane.b32.xlu0 %v2890_v48, %s2958_s11  ;;  %v2892_v51 = vpop.eup %2891 }
 0xe78   :  { %v1411_v52 = vadd.f32 1.0, %v2892_v51  ;;  %v2894_v53 = vpop.eup %2893 }
 0xe79   :  { %v1508_v54 = vadd.f32 1.0, %v2894_v53  ;;  %v2946_v53 = vld [vmem:[%s3554_s2 + $0x18] sm:$0xff] }
 0xe7a   :  { %2895 = vrcp.f32 %v1411_v52 }
 0xe7b   :  { %2897 = vrcp.f32 %v1508_v54  ;;  %v2947_v54 = vld [vmem:[%s3554_s2 + $0x10] sm:$0xff] }
 0xe87   :  { %v2896_v55 = vpop.eup %2895 }
 0xe88   :  { %v2898_v58 = vpop.eup %2897  ;;  %v1415_v61 = vmul.f32 %v2896_v55, %v3319_v19 }
 0xe89   :  { %v1512_v5 = vmul.f32 %v2898_v58, %v3323_v29 }
 0xee3   :  { %v1418_v56 = vpop.permute.xlu1 %1417 }
 0xee4   :  { %v1420_v57 = vmul.f32 %v2896_v55, %v1418_v56  ;;  %v2948_v56 = vld [vmem:[%s3554_s2 + $0x8] sm:$0xff] }
 0xee6   :  { %1422 = vrot.lane.b32.xlu1 %v1420_v57, %s2958_s11  ;;  %v2949_v57 = vld [vmem:[%s3554_s2] sm:$0xff] }
 0xee9   :  { %v1515_v59 = vpop.permute.xlu0 %1514 }
 0xeea   :  { %v1517_v60 = vmul.f32 %v2898_v58, %v1515_v59  ;;  %v2951_v59 = vld [vmem:[%s3555_s3 + $0x18] sm:$0xff] }
 0xeec   :  { %1519 = vrot.lane.b32.xlu0 %v1517_v60, %s2958_s11  ;;  %v2952_v60 = vld [vmem:[%s3555_s3 + $0x10] sm:$0xff] }
 0xf58   :  { %v1423_v62 = vpop.permute.xlu1 %1422 }
 0xf59   :  { %v3372_v63 = vadd.f32 %v1423_v62, %v1415_v61  ;;  %v2953_v61 = vld [vmem:[%s3555_s3 + $0x8] sm:$0xff]  ;;  %v2954_v62 = vld [vmem:[%s3555_s3] sm:$0xff] }
 0xf5b   :  { %2899 = vtanh.f32 %v3372_v63 }
 0xf5e   :  { %v1520_v6 = vpop.permute.xlu0 %1519 }
 0xf5f   :  { %v3376_v7 = vadd.f32 %v1520_v6, %v1512_v5 }
 0xf61   :  { %2901 = vtanh.f32 %v3376_v7 }
 0xf68   :  { %v2900_v8 = vpop.eup %2899 }
 0xf69   :  { %1428 = vrot.lane.b32.xlu1 %v2900_v8, %s2958_s11 }
 0xf6e   :  { %v2902_v9 = vpop.eup %2901 }
 0xf6f   :  { %1525 = vrot.lane.b32.xlu0 %v2902_v9, %s2958_s11 }
 0xfdb   :  { %v1429_v10 = vpop.permute.xlu1 %1428 }
 0xfdc   :  { %v1431_v11 = vmul.f32 %v2896_v55, %v1429_v10  ;;  %v2402_v10 = vld [vmem:[%s3553_s0 + $0x38] sm:$0xff] }
 0xfde   :  { %1606 = vrot.lane.b32.xlu1 %v1431_v11, %s2959_s28 }
 0xfe1   :  { %v1526_v12 = vpop.permute.xlu0 %1525 }
 0xfe2   :  { %v1528_v13 = vmul.f32 %v2898_v58, %v1526_v12  ;;  %v2950_v58 = vld [vmem:[%s3552_s1] sm:$0xff] }
 0xfe4   :  { %1530 = vrot.lane.b32.xlu0 %v1528_v13, %s2959_s28 }
0x1050   :  { %v1607_v14 = vpop.permute.xlu1 %1606 }
0x1051   :  { %2731 = vmatmul.mubr.msk.f32.vlgmr.msra.gmra.mxu1 %vm30_vm0, %v1607_v14 }
0x1052   :  { %2745 = vmatpush3.msra.mxu1 %v3058_v22  ;;  %2752 = vmatprep.mubr.msk.f32.mxu1 %vm2957_vm1, %v2956_v0  ;;  %v3396_v22 = vld [vmem:[%s3552_s1 + $0x18] sm:$0xff] }
0x1053   :  { %2746 = vmatprep.subr.mxu1 %v2956_v0 }
0x1054   :  { %2747 = vmatpush3.msra.mxu1 %v3063_v23  ;;  %v3406_v23 = vld [vmem:[%s3552_s1 + $0x10] sm:$0xff] }
0x1055   :  { %2748 = vmatprep.subr.mxu1 %v2956_v0 }
0x1056   :  { %v1531_v15 = vpop.permute.xlu0 %1530  ;;  %2749 = vmatpush3.msra.mxu1 %v3081_v26  ;;  %v3414_v26 = vld [vmem:[%s3552_s1 + $0x8] sm:$0xff] }
0x1057   :  { %2720 = vmatmul.mubr.msk.f32.vlgmr.msra.gmra.mxu0 %vm30_vm0, %v1531_v15  ;;  %2750 = vmatprep.subr.mxu1 %v2956_v0 }
0x1058   :  { %2734 = vmatpush3.msra.mxu0 %v3396_v22  ;;  %2741 = vmatprep.mubr.msk.f32.mxu0 %vm2957_vm1, %v2956_v0 }
0x1059   :  { %2735 = vmatprep.subr.mxu0 %v2956_v0  ;;  %2751 = vmatpush3.msra.mxu1 %v3095_v28 }
0x105a   :  { %2736 = vmatpush3.msra.mxu0 %v3406_v23  ;;  %2766 = vmatprep.subr.mxu1 %v2956_v0 }
0x105b   :  { %2737 = vmatprep.subr.mxu0 %v2956_v0 }
0x105c   :  { %2738 = vmatpush3.msra.mxu0 %v3414_v26 }
0x105d   :  { %2739 = vmatprep.subr.mxu0 %v2956_v0 }
0x105e   :  { %2740 = vmatpush3.msra.mxu0 %v3037_v4 }
0x105f   :  { %2742 = vmatmul.mubr.msk.f32.vlgmr.msra.gmra.mxu0 %vm30_vm0, %v1531_v15  ;;  %2755 = vmatprep.subr.mxu0 %v2956_v0 }
0x1060   :  { %2756 = vmatpush3.msra.mxu0 %v3068_v24  ;;  %2763 = vmatprep.mubr.msk.f32.mxu0 %vm2957_vm1, %v2956_v0 }
0x1061   :  { %2757 = vmatprep.subr.mxu0 %v2956_v0 }
0x1062   :  { %2758 = vmatpush3.msra.mxu0 %v3075_v25  ;;  %v2396_v25 = vld [vmem:[%s3553_s0 + $0x30] sm:$0xff] }
0x1063   :  { %2759 = vmatprep.subr.mxu0 %v2956_v0 }
0x1064   :  { %2760 = vmatpush3.msra.mxu0 %v3087_v27 }
0x1065   :  { %2761 = vmatprep.subr.mxu0 %v2956_v0 }
0x1066   :  { %2762 = vmatpush3.msra.mxu0 %v3108_v30 }
0x1067   :  { %2777 = vmatprep.subr.mxu0 %v2956_v0 }
0x1111   :  { %v1676_v4 = vpop.f32.mrf.mxu1 }
0x1113   :  { %v2732_v28 = vpop.f32.mrf.mxu1 }
0x1117   :  { %v1600_v24 = vpop.f32.mrf.mxu0 }
0x1118   :  { %v1604_v16 = vadd.f32 %v3149_v37, %v1600_v24 }
0x1119   :  { %v2721_v17 = vpop.f32.mrf.mxu0 }
0x111a   :  { %v1680_v18 = vadd.f32 %v1676_v4, %v1604_v16 }
0x111c   :  { %2903 = vtanh.f32 %v1680_v18  ;;  %v2395_v29 = vmul.f32 -1.442695, %v1680_v18 }
0x111f   :  { %v1773_v19 = vpop.f32.mrf.mxu0 }
0x1120   :  { %v1777_v27 = vadd.f32 %v2396_v25, %v1773_v19 }
0x1121   :  { %v2743_v20 = vpop.f32.mrf.mxu0 }
0x1122   :  { %2905 = vtanh.f32 %v1777_v27  ;;  %v2398_v31 = vmul.f32 -1.442695, %v1777_v27 }
0x1123   :  { %2907 = vpow2.f32 %v2395_v29 }
0x1124   :  { %2909 = vpow2.f32 %v2398_v31 }
0x1129   :  { %v2904_v21 = vpop.eup %2903 }
0x112a   :  { %1690 = vrot.lane.b32.xlu1 %v2904_v21, %s2958_s11 }
0x112f   :  { %v2906_v30 = vpop.eup %2905 }
0x1130   :  { %1787 = vrot.lane.b32.xlu0 %v2906_v30, %s2958_s11  ;;  %v2908_v32 = vpop.eup %2907 }
0x1131   :  { %v1684_v33 = vadd.f32 1.0, %v2908_v32  ;;  %v2910_v34 = vpop.eup %2909 }
0x1132   :  { %v1781_v35 = vadd.f32 1.0, %v2910_v34 }
0x1133   :  { %2911 = vrcp.f32 %v1684_v33 }
0x1134   :  { %2913 = vrcp.f32 %v1781_v35 }
0x1140   :  { %v2912_v36 = vpop.eup %2911 }
0x1141   :  { %v2914_v1 = vpop.eup %2913  ;;  %v1688_v40 = vmul.f32 %v2912_v36, %v3372_v63 }
0x1142   :  { %v1785_v43 = vmul.f32 %v2914_v1, %v3376_v7 }
0x119c   :  { %v1691_v38 = vpop.permute.xlu1 %1690 }
0x119d   :  { %v1693_v39 = vmul.f32 %v2912_v36, %v1691_v38 }
0x119f   :  { %1695 = vrot.lane.b32.xlu1 %v1693_v39, %s2958_s11 }
0x11a2   :  { %v1788_v2 = vpop.permute.xlu0 %1787 }
0x11a3   :  { %v1790_v3 = vmul.f32 %v2914_v1, %v1788_v2 }
0x11a5   :  { %1792 = vrot.lane.b32.xlu0 %v1790_v3, %s2958_s11 }
0x1211   :  { %v1696_v41 = vpop.permute.xlu1 %1695 }
0x1212   :  { %v3440_v42 = vadd.f32 %v1696_v41, %v1688_v40  ;;  %v2955_v41 = vld [vmem:[%s3556_s4] ss:$0 sm:$0xff] }
0x1214   :  { %2915 = vtanh.f32 %v3440_v42 }
0x1217   :  { %v1793_v44 = vpop.permute.xlu0 %1792 }
0x1218   :  { %v3444_v45 = vadd.f32 %v1793_v44, %v1785_v43 }
0x121a   :  { %2917 = vtanh.f32 %v3444_v45 }
0x1221   :  { %v2916_v46 = vpop.eup %2915 }
0x1222   :  { %1701 = vrot.lane.b32.xlu1 %v2916_v46, %s2958_s11 }
0x1227   :  { %v2918_v47 = vpop.eup %2917 }
0x1228   :  { %1798 = vrot.lane.b32.xlu0 %v2918_v47, %s2958_s11 }
0x1294   :  { %v1702_v48 = vpop.permute.xlu1 %1701 }
0x1295   :  { %v1704_v49 = vmul.f32 %v2912_v36, %v1702_v48 }
0x1297   :  { %1879 = vrot.lane.b32.xlu1 %v1704_v49, %s2959_s28 }
0x129a   :  { %v1799_v50 = vpop.permute.xlu0 %1798 }
0x129b   :  { %v1801_v51 = vmul.f32 %v2914_v1, %v1799_v50 }
0x129d   :  { %1803 = vrot.lane.b32.xlu0 %v1801_v51, %s2959_s28 }
0x1309   :  { %v1880_v52 = vpop.permute.xlu1 %1879 }
0x130a   :  { %2764 = vmatmul.mubr.msk.f32.vlgmr.msra.gmra.mxu0 %vm30_vm0, %v1880_v52 }
0x130b   :  { %2778 = vmatpush3.msra.mxu0 %v2946_v53  ;;  %2785 = vmatprep.mubr.msk.f32.mxu0 %vm2957_vm1, %v2956_v0 }
0x130c   :  { %2779 = vmatprep.subr.mxu0 %v2956_v0 }
0x130d   :  { %2780 = vmatpush3.msra.mxu0 %v2947_v54 }
0x130e   :  { %2781 = vmatprep.subr.mxu0 %v2956_v0 }
0x130f   :  { %v1804_v55 = vpop.permute.xlu0 %1803  ;;  %2782 = vmatpush3.msra.mxu0 %v2948_v56  ;;  %v2273_v56 = vld [vmem:[%s3557_s5 + $0x10] sm:$0xff] }
0x1310   :  { %2753 = vmatmul.mubr.msk.f32.vlgmr.msra.gmra.mxu1 %vm30_vm0, %v1804_v55  ;;  %2783 = vmatprep.subr.mxu0 %v2956_v0 }
0x1311   :  { %2767 = vmatpush3.msra.mxu1 %v3396_v22  ;;  %2774 = vmatprep.mubr.msk.f32.mxu1 %vm2957_vm1, %v2956_v0 }
0x1312   :  { %2768 = vmatprep.subr.mxu1 %v2956_v0  ;;  %2784 = vmatpush3.msra.mxu0 %v2949_v57  ;;  %v2272_v57 = vld [vmem:[%s3557_s5 + $0x8] sm:$0xff] }
0x1313   :  { %2769 = vmatpush3.msra.mxu1 %v3406_v23  ;;  %2799 = vmatprep.subr.mxu0 %v2956_v0 }
0x1314   :  { %2770 = vmatprep.subr.mxu1 %v2956_v0 }
0x1315   :  { %2771 = vmatpush3.msra.mxu1 %v3414_v26 }
0x1316   :  { %2772 = vmatprep.subr.mxu1 %v2956_v0 }
0x1317   :  { %2773 = vmatpush3.msra.mxu1 %v2950_v58  ;;  %v2271_v58 = vld [vmem:[%s3557_s5] sm:$0xff] }
0x1318   :  { %2775 = vmatmul.mubr.msk.f32.vlgmr.msra.gmra.mxu1 %vm30_vm0, %v1804_v55  ;;  %2788 = vmatprep.subr.mxu1 %v2956_v0  ;;  %v2274_v55 = vld [vmem:[%s3557_s5 + $0x18] sm:$0xff] }
0x1319   :  { %2789 = vmatpush3.msra.mxu1 %v2951_v59  ;;  %2796 = vmatprep.mubr.msk.f32.mxu1 %vm2957_vm1, %v2956_v0 }
0x131a   :  { %2790 = vmatprep.subr.mxu1 %v2956_v0 }
0x131b   :  { %2791 = vmatpush3.msra.mxu1 %v2952_v60 }
0x131c   :  { %2792 = vmatprep.subr.mxu1 %v2956_v0 }
0x131d   :  { %2793 = vmatpush3.msra.mxu1 %v2953_v61 }
0x131e   :  { %2794 = vmatprep.subr.mxu1 %v2956_v0 }
0x131f   :  { %2795 = vmatpush3.msra.mxu1 %v2954_v62 }
0x13ca   :  { %v1949_v63 = vpop.f32.mrf.mxu0 }
0x13cc   :  { %v2765_v5 = vpop.f32.mrf.mxu0 }
0x13d0   :  { %v1873_v6 = vpop.f32.mrf.mxu1 }
0x13d1   :  { %v1877_v7 = vadd.f32 %v3149_v37, %v1873_v6 }
0x13d2   :  { %v2754_v8 = vpop.f32.mrf.mxu1 }
0x13d3   :  { %v1953_v9 = vadd.f32 %v1949_v63, %v1877_v7 }
0x13d5   :  { %2919 = vtanh.f32 %v1953_v9  ;;  %v2401_v22 = vmul.f32 -1.442695, %v1953_v9 }
0x13d8   :  { %v2046_v11 = vpop.f32.mrf.mxu1 }
0x13d9   :  { %v2050_v12 = vadd.f32 %v2402_v10, %v2046_v11 }
0x13da   :  { %v2776_v13 = vpop.f32.mrf.mxu1 }
0x13db   :  { %2921 = vtanh.f32 %v2050_v12  ;;  %v2404_v37 = vmul.f32 -1.442695, %v2050_v12 }
0x13dc   :  { %2923 = vpow2.f32 %v2401_v22 }
0x13dd   :  { %2925 = vpow2.f32 %v2404_v37 }
0x13e2   :  { %v2920_v14 = vpop.eup %2919 }
0x13e3   :  { %1963 = vrot.lane.b32.xlu1 %v2920_v14, %s2958_s11 }
0x13e8   :  { %v2922_v15 = vpop.eup %2921 }
0x13e9   :  { %2060 = vrot.lane.b32.xlu0 %v2922_v15, %s2958_s11  ;;  %v2924_v23 = vpop.eup %2923 }
0x13ea   :  { %v1957_v26 = vadd.f32 1.0, %v2924_v23  ;;  %v2926_v4 = vpop.eup %2925 }
0x13eb   :  { %v2054_v28 = vadd.f32 1.0, %v2926_v4 }
0x13ec   :  { %2927 = vrcp.f32 %v1957_v26 }
0x13ed   :  { %2929 = vrcp.f32 %v2054_v28 }
0x13f9   :  { %v2928_v24 = vpop.eup %2927 }
0x13fa   :  { %v2930_v18 = vpop.eup %2929  ;;  %v1961_v27 = vmul.f32 %v2928_v24, %v3440_v42 }
0x13fb   :  { %v2058_v30 = vmul.f32 %v2930_v18, %v3444_v45 }
0x1455   :  { %v1964_v16 = vpop.permute.xlu1 %1963 }
0x1456   :  { %v1966_v17 = vmul.f32 %v2928_v24, %v1964_v16 }
0x1458   :  { %1968 = vrot.lane.b32.xlu1 %v1966_v17, %s2958_s11 }
0x145b   :  { %v2061_v25 = vpop.permute.xlu0 %2060 }
0x145c   :  { %v2063_v19 = vmul.f32 %v2930_v18, %v2061_v25 }
0x145e   :  { %2065 = vrot.lane.b32.xlu0 %v2063_v19, %s2958_s11 }
0x14ca   :  { %v1969_v20 = vpop.permute.xlu1 %1968 }
0x14cb   :  { %v1971_v21 = vadd.f32 %v1969_v20, %v1961_v27 }
0x14cd   :  { %2931 = vtanh.f32 %v1971_v21 }
0x14d0   :  { %v2066_v29 = vpop.permute.xlu0 %2065 }
0x14d1   :  { %v2068_v31 = vadd.f32 %v2066_v29, %v2058_v30 }
0x14d3   :  { %2933 = vtanh.f32 %v2068_v31 }
0x14da   :  { %v2932_v32 = vpop.eup %2931 }
0x14db   :  { %1974 = vrot.lane.b32.xlu1 %v2932_v32, %s2958_s11 }
0x14e0   :  { %v2934_v33 = vpop.eup %2933 }
0x14e1   :  { %2071 = vrot.lane.b32.xlu0 %v2934_v33, %s2958_s11 }
0x154d   :  { %v1975_v34 = vpop.permute.xlu1 %1974 }
0x154e   :  { %v1977_v35 = vmul.f32 %v2928_v24, %v1975_v34 }
0x1550   :  { %2152 = vrot.lane.b32.xlu1 %v1977_v35, %s2959_s28 }
0x1553   :  { %v2072_v36 = vpop.permute.xlu0 %2071 }
0x1554   :  { %v2074_v38 = vmul.f32 %v2930_v18, %v2072_v36 }
0x1556   :  { %2076 = vrot.lane.b32.xlu0 %v2074_v38, %s2959_s28 }
0x15c2   :  { %v2153_v39 = vpop.permute.xlu1 %2152 }
0x15c3   :  { %2797 = vmatmul.mubr.msk.f32.vlgmr.msra.gmra.mxu1 %vm30_vm0, %v2153_v39 }
0x15c8   :  { %v2077_v1 = vpop.permute.xlu0 %2076 }
0x15c9   :  { %2252 = vst.msk [vmem:[#allocation2] sm:$0xff] %vm30_vm0, %v2077_v1  ;;  %2786 = vmatmul.mubr.msk.f32.vlgmr.msra.gmra.mxu0 %vm30_vm0, %v2077_v1 }
0x15ca   :  { %2807 = vmatprep.mubr.msk.f32.mxu0 %vm2957_vm1, %v2956_v0  ;;  %2800 = vmatpush3.msra.mxu0 %v2274_v55 }
0x15cb   :  { %2801 = vmatprep.subr.mxu0 %v2956_v0 }
0x15cc   :  { %2802 = vmatpush3.msra.mxu0 %v2273_v56 }
0x15cd   :  { %2803 = vmatprep.subr.mxu0 %v2956_v0 }
0x15ce   :  { %2804 = vmatpush3.msra.mxu0 %v2272_v57 }
0x15cf   :  { %2805 = vmatprep.subr.mxu0 %v2956_v0  ;;  %v2408_v0 = vld [vmem:[%s3558_s6] ss:$0 sm:$0xff] }
0x15d0   :  { %2806 = vmatpush3.msra.mxu0 %v2271_v58 }
0x1683   :  { %v2222_v2 = vpop.f32.mrf.mxu1 }
0x1685   :  { %v2798_v3 = vpop.f32.mrf.mxu1 }
0x1689   :  { %v2146_v40 = vpop.f32.mrf.mxu0 }
0x168a   :  { %v2150_v42 = vadd.f32 %v2955_v41, %v2146_v40 }
0x168b   :  { %v2787_v43 = vpop.f32.mrf.mxu0 }
0x168c   :  { %v2226_v44 = vadd.f32 %v2222_v2, %v2150_v42 }
0x168e   :  { %2935 = vtanh.f32 %v2226_v44  ;;  %v2407_v46 = vmul.f32 -1.442695, %v2226_v44 }
0x1690   :  { %2937 = vpow2.f32 %v2407_v46 }
0x169b   :  { %v2936_v45 = vpop.eup %2935 }
0x169c   :  { %2236 = vrot.lane.b32.xlu0 %v2936_v45, %s2958_s11 }
0x169d   :  { %v2938_v47 = vpop.eup %2937 }
0x169e   :  { %v2230_v48 = vadd.f32 1.0, %v2938_v47 }
0x16a0   :  { %2939 = vrcp.f32 %v2230_v48 }
0x16ad   :  { %v2940_v49 = vpop.eup %2939 }
0x16ae   :  { %v2234_v52 = vmul.f32 %v2940_v49, %v1971_v21 }
0x170e   :  { %v2237_v50 = vpop.permute.xlu0 %2236 }
0x170f   :  { %v2239_v51 = vmul.f32 %v2940_v49, %v2237_v50 }
0x1711   :  { %2241 = vrot.lane.b32.xlu1 %v2239_v51, %s2958_s11 }
0x1783   :  { %v2242_v53 = vpop.permute.xlu1 %2241 }
0x1784   :  { %v2244_v54 = vadd.f32 %v2242_v53, %v2234_v52 }
0x1786   :  { %2941 = vtanh.f32 %v2244_v54 }
0x1793   :  { %v2942_v59 = vpop.eup %2941 }
0x1794   :  { %2247 = vrot.lane.b32.xlu0 %v2942_v59, %s2958_s11 }
0x1798   :  { %2254 = vrot.lane.b32.xlu0 %v2068_v31, %s2960_s9 }
0x1806   :  { %v2248_v60 = vpop.permute.xlu0 %2247 }
0x1807   :  { %v2250_v61 = vmul.f32 %v2940_v49, %v2248_v60 }
0x1809   :  { %2259 = vrot.lane.b32.xlu1 %v2250_v61, %s2959_s28 }
0x180a   :  { %v2255_v62 = vpop.permute.xlu0 %2254 }
0x180b   :  { %2257 = vst.msk [vmem:[#allocation3] sm:$0xff] %vm30_vm0, %v2255_v62 }
0x180d   :  { %2264 = vrot.lane.b32.xlu1 %v2244_v54, %s2960_s9 }
0x187b   :  { %v2260_v63 = vpop.permute.xlu1 %2259 }
0x187c   :  { %2262 = vst.msk [vmem:[#allocation4] sm:$0xff] %vm30_vm0, %v2260_v63  ;;  %2808 = vmatmul.mubr.msk.f32.vlgmr.msra.gmra.mxu0 %vm30_vm0, %v2260_v63 }
0x187f   :  { %v2265_v5 = vpop.permute.xlu1 %2264 }
0x1880   :  { %2267 = vst.msk [vmem:[#allocation5] sm:$0xff] %vm30_vm0, %v2265_v5 }
0x193c   :  { %v2350_v6 = vpop.f32.mrf.mxu0 }
0x193d   :  { %v2351_v7 = vadd.f32 %v2408_v0, %v2350_v6 }
0x193e   :  { %v2809_v8 = vpop.f32.mrf.mxu0 }
0x193f   :  { %2355 = vst.msk [vmem:[%s3559_s7] sm:$0xff] %vm2354_vm2, %v2351_v7 }

</bundles_post_ra>
